<compile_context>
chip_gen: v6e
topology: v6e:2x2x1
jax: 0.10.0
libtpu: 0.0.40
codegen_flags: <defaults>
</compile_context>

<pallas_src>
import jax
import jax.numpy as jnp
from jax.experimental import pallas as pl
from jax.experimental.pallas import tpu as pltpu

# ----------------------------- model config (small, synthetic) -----------------
B, S = 2, 8                 # batch, sequence length (max_length analogue)
HIDDEN = 32                 # embed_dim analogue of 768
NUM_HEADS = 4
HEAD_DIM = HIDDEN // NUM_HEADS
INTERMEDIATE = 64
NUM_LAYERS = 2
VOCAB = 64
MAX_POS = 16
NUM_CLASSES = 2
CLS_PAD = 128               # pad classifier output to a full 128-lane store
EPS = 1e-12                 # BERT layer-norm eps
ATTN_SCALE = 1.0 / (HEAD_DIM ** 0.5)
INV_SQRT2 = 0.7071067811865476


# ----------------------------- fused Pallas kernel ------------------------------
def _cls_model_kernel(
    ids_ref, mask_ref,                        # (B*S,1) int32 ids ; (B,S) f32 mask
    word_emb_ref, pos_type_ref,               # embedding tables (VMEM-resident)
    emb_ln_g_ref, emb_ln_b_ref,               # embedding layer-norm
    wqkv_ref, bqkv_ref, wo_ref, bo_ref,       # per-layer attention params (stacked over L)
    ln1_g_ref, ln1_b_ref,
    w1_ref, b1_ref, w2_ref, b2_ref,           # per-layer FFN params (stacked over L)
    ln2_g_ref, ln2_b_ref,
    pool_w_ref, pool_b_ref,                   # BERT pooler
    fc_w_ref, fc_b_ref,                       # classifier head (padded to CLS_PAD)
    out_ref,                                  # (B, CLS_PAD) logits
):
    def layer_norm(y, g, b):
        # fused stats: var = E[y^2] - mu^2 (mean and mean-of-squares are independent)
        mu = jnp.mean(y, axis=-1, keepdims=True)
        ms = jnp.mean(y * y, axis=-1, keepdims=True)
        var = ms - mu * mu
        return (y - mu) * jax.lax.rsqrt(var + EPS) * g + b

    # ----- in-kernel embedding lookup (one-hot matmul against resident table) ----
    ids = ids_ref[...]                                                   # (B*S, 1) int32
    one_hot = (ids == jax.lax.broadcasted_iota(jnp.int32, (B * S, VOCAB), 1)
               ).astype(jnp.float32)                                     # (B*S, V)
    x = jnp.dot(one_hot, word_emb_ref[...],
                preferred_element_type=jnp.float32) + pos_type_ref[...]  # (B*S, H)
    x = layer_norm(x, emb_ln_g_ref[...], emb_ln_b_ref[...])

    # Additive attention mask, one (1, S) row per example.
    add_mask = (1.0 - mask_ref[...]) * -10000.0                          # (B, S)

    # ----- encoder layers (static unroll; weights are VMEM-resident) -------------
    for l in range(NUM_LAYERS):
        # Fused QKV projection for the whole batch: one (B*S, H) @ (H, 3H) matmul.
        qkv = jnp.dot(x, wqkv_ref[l], preferred_element_type=jnp.float32) + bqkv_ref[l]

        # Scores for every (example, head) pair, sublane-stacked -> one softmax.
        score_blocks = []
        for b in range(B):
            rows = slice(b * S, (b + 1) * S)
            mrow = add_mask[b:b + 1, :]                                  # (1, S)
            for h in range(NUM_HEADS):
                qh = qkv[rows, h * HEAD_DIM:(h + 1) * HEAD_DIM]                           # (S, D)
                kh = qkv[rows, HIDDEN + h * HEAD_DIM:HIDDEN + (h + 1) * HEAD_DIM]         # (S, D)
                s = jax.lax.dot_general(qh, kh, (((1,), (1,)), ((), ())),
                                        preferred_element_type=jnp.float32) * ATTN_SCALE  # (S, S)
                score_blocks.append(s + mrow)
        s_all = jnp.concatenate(score_blocks, axis=0)                    # (B*NH*S, S)

        # One softmax pass over all examples/heads (single max/exp/sum/recip issue).
        s_all = s_all - jnp.max(s_all, axis=-1, keepdims=True)
        p_all = jnp.exp(s_all)
        p_all = p_all * pl.reciprocal(jnp.sum(p_all, axis=-1, keepdims=True), approx=True)

        # Per-head contexts, lane-concat back to (S, H) per example, sublane-concat
        # over examples -> ONE output-projection matmul (no serial MRF drain chain).
        ctx_rows = []
        for b in range(B):
            rows = slice(b * S, (b + 1) * S)
            heads = []
            for h in range(NUM_HEADS):
                blk = (b * NUM_HEADS + h) * S
                p_bh = p_all[blk:blk + S, :]                                              # (S, S)
                vh = qkv[rows, 2 * HIDDEN + h * HEAD_DIM:2 * HIDDEN + (h + 1) * HEAD_DIM] # (S, D)
                heads.append(jnp.dot(p_bh, vh, preferred_element_type=jnp.float32))       # (S, D)
            ctx_rows.append(jnp.concatenate(heads, axis=-1))             # (S, H)
        ctx = jnp.concatenate(ctx_rows, axis=0)                          # (B*S, H)

        attn = jnp.dot(ctx, wo_ref[l], preferred_element_type=jnp.float32) + bo_ref[l]
        x = layer_norm(attn + x, ln1_g_ref[l], ln1_b_ref[l])

        # FFN with exact (erf) GELU, as in BERT.  (tanh-approx GELU would route via
        # the idle EUP slot but deviates slightly from the reference.)
        h1 = jnp.dot(x, w1_ref[l], preferred_element_type=jnp.float32) + b1_ref[l]   # (B*S, I)
        h1 = 0.5 * h1 * (1.0 + jax.lax.erf(h1 * INV_SQRT2))
        h2 = jnp.dot(h1, w2_ref[l], preferred_element_type=jnp.float32) + b2_ref[l]  # (B*S, H)
        x = layer_norm(h2 + x, ln2_g_ref[l], ln2_b_ref[l])

    # ----- pooler (tanh(dense(hidden[:, 0]))) and classifier head -----------------
    cls_tok = jnp.concatenate([x[b * S:b * S + 1, :] for b in range(B)], axis=0)  # (B, H)
    pooled = jnp.tanh(jnp.dot(cls_tok, pool_w_ref[...],
                              preferred_element_type=jnp.float32) + pool_b_ref[...])
    out_ref[...] = jnp.dot(pooled, fc_w_ref[...],
                           preferred_element_type=jnp.float32) + fc_b_ref[...]    # (B, CLS_PAD)


# ----------------------------- parameters (deterministic) -----------------------
def init_params(key):
    def nrm(k, shape):
        return jax.random.normal(k, shape, dtype=jnp.float32) * 0.02

    keys = iter(jax.random.split(key, 8 + NUM_LAYERS * 8))
    p = {
        "word_emb": nrm(next(keys), (VOCAB, HIDDEN)),
        "pos_emb": nrm(next(keys), (MAX_POS, HIDDEN)),
        "type_emb": nrm(next(keys), (2, HIDDEN)),
        "emb_ln_g": jnp.ones((HIDDEN,), jnp.float32),
        "emb_ln_b": jnp.zeros((HIDDEN,), jnp.float32),
        "pool_w": nrm(next(keys), (HIDDEN, HIDDEN)),
        "pool_b": jnp.zeros((HIDDEN,), jnp.float32),
        "fc_w": nrm(next(keys), (HIDDEN, NUM_CLASSES)),
        "fc_b": jnp.zeros((NUM_CLASSES,), jnp.float32),
        "layers": [],
    }
    for _ in range(NUM_LAYERS):
        lyr = {
            "wq": nrm(next(keys), (HIDDEN, HIDDEN)), "bq": jnp.zeros((HIDDEN,), jnp.float32),
            "wk": nrm(next(keys), (HIDDEN, HIDDEN)), "bk": jnp.zeros((HIDDEN,), jnp.float32),
            "wv": nrm(next(keys), (HIDDEN, HIDDEN)), "bv": jnp.zeros((HIDDEN,), jnp.float32),
            "wo": nrm(next(keys), (HIDDEN, HIDDEN)), "bo": jnp.zeros((HIDDEN,), jnp.float32),
            "ln1_g": jnp.ones((HIDDEN,), jnp.float32), "ln1_b": jnp.zeros((HIDDEN,), jnp.float32),
            "w1": nrm(next(keys), (HIDDEN, INTERMEDIATE)), "b1": jnp.zeros((INTERMEDIATE,), jnp.float32),
            "w2": nrm(next(keys), (INTERMEDIATE, HIDDEN)), "b2": jnp.zeros((HIDDEN,), jnp.float32),
            "ln2_g": jnp.ones((HIDDEN,), jnp.float32), "ln2_b": jnp.zeros((HIDDEN,), jnp.float32),
        }
        p["layers"].append(lyr)
    return p


# ----------------------------- forward pass --------------------------------------
def cls_model_forward(params, input_ids, atn_mask):
    """input_ids: (B,S) int32 ; atn_mask: (B,S) int32 (1 = real token, 0 = pad)."""
    ids_2d = input_ids.reshape(B * S, 1).astype(jnp.int32)                   # (B*S, 1)
    mask_f = atn_mask.astype(jnp.float32)                                    # (B, S)

    # Combined positional + token-type embedding, tiled over the batch (constant).
    pos_type = jnp.tile(params["pos_emb"][:S] + params["type_emb"][0][None, :], (B, 1))  # (B*S, H)

    lyrs = params["layers"]
    # Stack per-layer params (fused QKV weight/bias) so the kernel indexes ref[l].
    wqkv = jnp.stack([jnp.concatenate([l["wq"], l["wk"], l["wv"]], axis=1) for l in lyrs])  # (L,H,3H)
    bqkv = jnp.stack([jnp.concatenate([l["bq"], l["bk"], l["bv"]])[None, :] for l in lyrs]) # (L,1,3H)
    wo   = jnp.stack([l["wo"] for l in lyrs])                                               # (L,H,H)
    bo   = jnp.stack([l["bo"][None, :] for l in lyrs])                                      # (L,1,H)
    ln1g = jnp.stack([l["ln1_g"][None, :] for l in lyrs])
    ln1b = jnp.stack([l["ln1_b"][None, :] for l in lyrs])
    w1   = jnp.stack([l["w1"] for l in lyrs])                                               # (L,H,I)
    b1   = jnp.stack([l["b1"][None, :] for l in lyrs])                                      # (L,1,I)
    w2   = jnp.stack([l["w2"] for l in lyrs])                                               # (L,I,H)
    b2   = jnp.stack([l["b2"][None, :] for l in lyrs])                                      # (L,1,H)
    ln2g = jnp.stack([l["ln2_g"][None, :] for l in lyrs])
    ln2b = jnp.stack([l["ln2_b"][None, :] for l in lyrs])

    emb_ln_g = params["emb_ln_g"][None, :]
    emb_ln_b = params["emb_ln_b"][None, :]
    pool_w = params["pool_w"]
    pool_b = params["pool_b"][None, :]
    # Pad classifier to 128 output lanes (lane-dense store); sliced back below.
    fc_w = jnp.zeros((HIDDEN, CLS_PAD), jnp.float32).at[:, :NUM_CLASSES].set(params["fc_w"])
    fc_b = jnp.zeros((1, CLS_PAD), jnp.float32).at[:, :NUM_CLASSES].set(params["fc_b"][None, :])

    # Single invocation, no grid: every operand is a whole-array VMEM block
    # (total state < 100 KB), the batch lives in the sublane dimension.
    out = pl.pallas_call(
        _cls_model_kernel,
        out_shape=jax.ShapeDtypeStruct((B, CLS_PAD), jnp.float32),
    )(ids_2d, mask_f,
      params["word_emb"], pos_type, emb_ln_g, emb_ln_b,
      wqkv, bqkv, wo, bo, ln1g, ln1b, w1, b1, w2, b2, ln2g, ln2b,
      pool_w, pool_b, fc_w, fc_b)

    return out[:, :NUM_CLASSES]                                              # (B, NUM_CLASSES)


# ----------------------------- main -----------------------------------------------
if __name__ == "__main__":
    # TODO(synk): the PyTorch tokenize() (string -> ids via HuggingFace tokenizer)
    # has no Pallas/TPU equivalent; token ids + attention mask are built directly.
    key = jax.random.PRNGKey(0)
    pkey, ikey = jax.random.split(key)
    params = init_params(pkey)

    input_ids = jax.random.randint(ikey, (B, S), minval=0, maxval=VOCAB, dtype=jnp.int32)
    # Example 0: all real tokens; example 1: last 3 positions are padding.
    atn_mask = jnp.array([[1] * S, [1] * (S - 3) + [0] * 3], dtype=jnp.int32)

    logits = jax.jit(lambda ids, m: cls_model_forward(params, ids, m))(input_ids, atn_mask)
    jax.block_until_ready(logits)
    assert logits.shape == (B, NUM_CLASSES) and logits.dtype == jnp.float32
    print("KERNEL_OK")
</pallas_src>

<mosaic_0001>
module attributes {stable_mosaic.version = 11 : i64} {
  func.func @_cls_model_kernel(%arg0: memref<16x1xi32, #tpu.memory_space<vmem>>, %arg1: memref<2x8xf32, #tpu.memory_space<vmem>>, %arg2: memref<64x32xf32, #tpu.memory_space<vmem>>, %arg3: memref<16x32xf32, #tpu.memory_space<vmem>>, %arg4: memref<1x32xf32, #tpu.memory_space<vmem>>, %arg5: memref<1x32xf32, #tpu.memory_space<vmem>>, %arg6: memref<2x32x96xf32, #tpu.memory_space<vmem>>, %arg7: memref<2x1x96xf32, #tpu.memory_space<vmem>>, %arg8: memref<2x32x32xf32, #tpu.memory_space<vmem>>, %arg9: memref<2x1x32xf32, #tpu.memory_space<vmem>>, %arg10: memref<2x1x32xf32, #tpu.memory_space<vmem>>, %arg11: memref<2x1x32xf32, #tpu.memory_space<vmem>>, %arg12: memref<2x32x64xf32, #tpu.memory_space<vmem>>, %arg13: memref<2x1x64xf32, #tpu.memory_space<vmem>>, %arg14: memref<2x64x32xf32, #tpu.memory_space<vmem>>, %arg15: memref<2x1x32xf32, #tpu.memory_space<vmem>>, %arg16: memref<2x1x32xf32, #tpu.memory_space<vmem>>, %arg17: memref<2x1x32xf32, #tpu.memory_space<vmem>>, %arg18: memref<32x32xf32, #tpu.memory_space<vmem>>, %arg19: memref<1x32xf32, #tpu.memory_space<vmem>>, %arg20: memref<32x128xf32, #tpu.memory_space<vmem>>, %arg21: memref<1x128xf32, #tpu.memory_space<vmem>>, %arg22: memref<2x128xf32, #tpu.memory_space<vmem>>) attributes {dimension_semantics = [], scalar_prefetch = 0 : i64, scratch_operands = 0 : i64, tpu.core_type = #tpu.core_type<tc>} {
    %c0 = arith.constant 0 : index
    %c0_0 = arith.constant 0 : index
    %0 = vector.load %arg0[%c0, %c0_0] : memref<16x1xi32, #tpu.memory_space<vmem>>, vector<16x1xi32>
    %1 = tpu.iota {dimensions = array<i32: 1>} : vector<16x64xi32>
    %2 = vector.broadcast %0 : vector<16x1xi32> to vector<16x64xi32>
    %3 = arith.cmpi eq, %2, %1 : vector<16x64xi32>
    %4 = arith.extui %3 : vector<16x64xi1> to vector<16x64xi32>
    %5 = arith.sitofp %4 : vector<16x64xi32> to vector<16x64xf32>
    %c0_1 = arith.constant 0 : index
    %c0_2 = arith.constant 0 : index
    %6 = vector.load %arg2[%c0_1, %c0_2] : memref<64x32xf32, #tpu.memory_space<vmem>>, vector<64x32xf32>
    %cst = arith.constant dense<0.000000e+00> : vector<16x32xf32>
    %7 = tpu.matmul %5, %6, %cst {dimension_numbers = #tpu.dot_dimension_numbers<[1], [0], [0], [1], [0, 0, 1, 1], [], []>} : vector<16x64xf32>, vector<64x32xf32>, vector<16x32xf32> -> vector<16x32xf32>
    %c0_3 = arith.constant 0 : index
    %c0_4 = arith.constant 0 : index
    %8 = vector.load %arg3[%c0_3, %c0_4] : memref<16x32xf32, #tpu.memory_space<vmem>>, vector<16x32xf32>
    %9 = arith.addf %7, %8 : vector<16x32xf32>
    %c0_5 = arith.constant 0 : index
    %c0_6 = arith.constant 0 : index
    %10 = vector.load %arg4[%c0_5, %c0_6] : memref<1x32xf32, #tpu.memory_space<vmem>>, vector<1x32xf32>
    %c0_7 = arith.constant 0 : index
    %c0_8 = arith.constant 0 : index
    %11 = vector.load %arg5[%c0_7, %c0_8] : memref<1x32xf32, #tpu.memory_space<vmem>>, vector<1x32xf32>
    %cst_9 = arith.constant dense<0.000000e+00> : vector<16xf32>
    %12 = vector.multi_reduction <add>, %9, %cst_9 [1] : vector<16x32xf32> to vector<16xf32>
    %13 = vector.shape_cast %12 : vector<16xf32> to vector<16x1xf32>
    %cst_10 = arith.constant 3.200000e+01 : f32
    %14 = vector.broadcast %cst_10 : f32 to vector<16x1xf32>
    %15 = arith.divf %13, %14 : vector<16x1xf32>
    %16 = arith.mulf %9, %9 : vector<16x32xf32>
    %cst_11 = arith.constant dense<0.000000e+00> : vector<16xf32>
    %17 = vector.multi_reduction <add>, %16, %cst_11 [1] : vector<16x32xf32> to vector<16xf32>
    %18 = vector.shape_cast %17 : vector<16xf32> to vector<16x1xf32>
    %cst_12 = arith.constant 3.200000e+01 : f32
    %19 = vector.broadcast %cst_12 : f32 to vector<16x1xf32>
    %20 = arith.divf %18, %19 : vector<16x1xf32>
    %21 = arith.mulf %15, %15 : vector<16x1xf32>
    %22 = arith.subf %20, %21 : vector<16x1xf32>
    %23 = vector.broadcast %15 : vector<16x1xf32> to vector<16x32xf32>
    %24 = arith.subf %9, %23 : vector<16x32xf32>
    %cst_13 = arith.constant 9.99999996E-13 : f32
    %25 = vector.broadcast %cst_13 : f32 to vector<16x1xf32>
    %26 = arith.addf %22, %25 : vector<16x1xf32>
    %27 = math.rsqrt %26 : vector<16x1xf32>
    %28 = vector.broadcast %27 : vector<16x1xf32> to vector<16x32xf32>
    %29 = arith.mulf %24, %28 : vector<16x32xf32>
    %30 = vector.broadcast %10 : vector<1x32xf32> to vector<16x32xf32>
    %31 = arith.mulf %29, %30 : vector<16x32xf32>
    %32 = vector.broadcast %11 : vector<1x32xf32> to vector<16x32xf32>
    %33 = arith.addf %31, %32 : vector<16x32xf32>
    %c0_14 = arith.constant 0 : index
    %c0_15 = arith.constant 0 : index
    %34 = vector.load %arg1[%c0_14, %c0_15] : memref<2x8xf32, #tpu.memory_space<vmem>>, vector<2x8xf32>
    %cst_16 = arith.constant 1.000000e+00 : f32
    %35 = vector.broadcast %cst_16 : f32 to vector<2x8xf32>
    %36 = arith.subf %35, %34 : vector<2x8xf32>
    %cst_17 = arith.constant -1.000000e+04 : f32
    %37 = vector.broadcast %cst_17 : f32 to vector<2x8xf32>
    %38 = arith.mulf %36, %37 : vector<2x8xf32>
    %c0_18 = arith.constant 0 : index
    %c0_19 = arith.constant 0 : index
    %c0_20 = arith.constant 0 : index
    %39 = vector.load %arg6[%c0_18, %c0_19, %c0_20] : memref<2x32x96xf32, #tpu.memory_space<vmem>>, vector<1x32x96xf32>
    %40 = vector.shape_cast %39 : vector<1x32x96xf32> to vector<32x96xf32>
    %cst_21 = arith.constant dense<0.000000e+00> : vector<16x96xf32>
    %41 = tpu.matmul %33, %40, %cst_21 {dimension_numbers = #tpu.dot_dimension_numbers<[1], [0], [0], [1], [0, 0, 1, 1], [], []>} : vector<16x32xf32>, vector<32x96xf32>, vector<16x96xf32> -> vector<16x96xf32>
    %c0_22 = arith.constant 0 : index
    %c0_23 = arith.constant 0 : index
    %c0_24 = arith.constant 0 : index
    %42 = vector.load %arg7[%c0_22, %c0_23, %c0_24] : memref<2x1x96xf32, #tpu.memory_space<vmem>>, vector<1x1x96xf32>
    %43 = vector.shape_cast %42 : vector<1x1x96xf32> to vector<1x96xf32>
    %44 = vector.broadcast %43 : vector<1x96xf32> to vector<16x96xf32>
    %45 = arith.addf %41, %44 : vector<16x96xf32>
    %46 = vector.extract_strided_slice %38 {offsets = [0, 0], sizes = [1, 8], strides = [1, 1]} : vector<2x8xf32> to vector<1x8xf32>
    %47 = vector.extract_strided_slice %45 {offsets = [0, 0], sizes = [8, 8], strides = [1, 1]} : vector<16x96xf32> to vector<8x8xf32>
    %48 = vector.extract_strided_slice %45 {offsets = [0, 32], sizes = [8, 8], strides = [1, 1]} : vector<16x96xf32> to vector<8x8xf32>
    %cst_25 = arith.constant dense<0.000000e+00> : vector<8x8xf32>
    %49 = tpu.matmul %47, %48, %cst_25 {dimension_numbers = #tpu.dot_dimension_numbers<[1], [1], [0], [0], [0, 0, 1, 0], [], []>} : vector<8x8xf32>, vector<8x8xf32>, vector<8x8xf32> -> vector<8x8xf32>
    %cst_26 = arith.constant 0.353553385 : f32
    %50 = vector.broadcast %cst_26 : f32 to vector<8x8xf32>
    %51 = arith.mulf %49, %50 : vector<8x8xf32>
    %52 = vector.broadcast %46 : vector<1x8xf32> to vector<8x8xf32>
    %53 = arith.addf %51, %52 : vector<8x8xf32>
    %54 = vector.extract_strided_slice %45 {offsets = [0, 8], sizes = [8, 8], strides = [1, 1]} : vector<16x96xf32> to vector<8x8xf32>
    %55 = vector.extract_strided_slice %45 {offsets = [0, 40], sizes = [8, 8], strides = [1, 1]} : vector<16x96xf32> to vector<8x8xf32>
    %cst_27 = arith.constant dense<0.000000e+00> : vector<8x8xf32>
    %56 = tpu.matmul %54, %55, %cst_27 {dimension_numbers = #tpu.dot_dimension_numbers<[1], [1], [0], [0], [0, 0, 1, 0], [], []>} : vector<8x8xf32>, vector<8x8xf32>, vector<8x8xf32> -> vector<8x8xf32>
    %cst_28 = arith.constant 0.353553385 : f32
    %57 = vector.broadcast %cst_28 : f32 to vector<8x8xf32>
    %58 = arith.mulf %56, %57 : vector<8x8xf32>
    %59 = vector.broadcast %46 : vector<1x8xf32> to vector<8x8xf32>
    %60 = arith.addf %58, %59 : vector<8x8xf32>
    %61 = vector.extract_strided_slice %45 {offsets = [0, 16], sizes = [8, 8], strides = [1, 1]} : vector<16x96xf32> to vector<8x8xf32>
    %62 = vector.extract_strided_slice %45 {offsets = [0, 48], sizes = [8, 8], strides = [1, 1]} : vector<16x96xf32> to vector<8x8xf32>
    %cst_29 = arith.constant dense<0.000000e+00> : vector<8x8xf32>
    %63 = tpu.matmul %61, %62, %cst_29 {dimension_numbers = #tpu.dot_dimension_numbers<[1], [1], [0], [0], [0, 0, 1, 0], [], []>} : vector<8x8xf32>, vector<8x8xf32>, vector<8x8xf32> -> vector<8x8xf32>
    %cst_30 = arith.constant 0.353553385 : f32
    %64 = vector.broadcast %cst_30 : f32 to vector<8x8xf32>
    %65 = arith.mulf %63, %64 : vector<8x8xf32>
    %66 = vector.broadcast %46 : vector<1x8xf32> to vector<8x8xf32>
    %67 = arith.addf %65, %66 : vector<8x8xf32>
    %68 = vector.extract_strided_slice %45 {offsets = [0, 24], sizes = [8, 8], strides = [1, 1]} : vector<16x96xf32> to vector<8x8xf32>
    %69 = vector.extract_strided_slice %45 {offsets = [0, 56], sizes = [8, 8], strides = [1, 1]} : vector<16x96xf32> to vector<8x8xf32>
    %cst_31 = arith.constant dense<0.000000e+00> : vector<8x8xf32>
    %70 = tpu.matmul %68, %69, %cst_31 {dimension_numbers = #tpu.dot_dimension_numbers<[1], [1], [0], [0], [0, 0, 1, 0], [], []>} : vector<8x8xf32>, vector<8x8xf32>, vector<8x8xf32> -> vector<8x8xf32>
    %cst_32 = arith.constant 0.353553385 : f32
    %71 = vector.broadcast %cst_32 : f32 to vector<8x8xf32>
    %72 = arith.mulf %70, %71 : vector<8x8xf32>
    %73 = vector.broadcast %46 : vector<1x8xf32> to vector<8x8xf32>
    %74 = arith.addf %72, %73 : vector<8x8xf32>
    %75 = vector.extract_strided_slice %38 {offsets = [1, 0], sizes = [1, 8], strides = [1, 1]} : vector<2x8xf32> to vector<1x8xf32>
    %76 = vector.extract_strided_slice %45 {offsets = [8, 0], sizes = [8, 8], strides = [1, 1]} : vector<16x96xf32> to vector<8x8xf32>
    %77 = vector.extract_strided_slice %45 {offsets = [8, 32], sizes = [8, 8], strides = [1, 1]} : vector<16x96xf32> to vector<8x8xf32>
    %cst_33 = arith.constant dense<0.000000e+00> : vector<8x8xf32>
    %78 = tpu.matmul %76, %77, %cst_33 {dimension_numbers = #tpu.dot_dimension_numbers<[1], [1], [0], [0], [0, 0, 1, 0], [], []>} : vector<8x8xf32>, vector<8x8xf32>, vector<8x8xf32> -> vector<8x8xf32>
    %cst_34 = arith.constant 0.353553385 : f32
    %79 = vector.broadcast %cst_34 : f32 to vector<8x8xf32>
    %80 = arith.mulf %78, %79 : vector<8x8xf32>
    %81 = vector.broadcast %75 : vector<1x8xf32> to vector<8x8xf32>
    %82 = arith.addf %80, %81 : vector<8x8xf32>
    %83 = vector.extract_strided_slice %45 {offsets = [8, 8], sizes = [8, 8], strides = [1, 1]} : vector<16x96xf32> to vector<8x8xf32>
    %84 = vector.extract_strided_slice %45 {offsets = [8, 40], sizes = [8, 8], strides = [1, 1]} : vector<16x96xf32> to vector<8x8xf32>
    %cst_35 = arith.constant dense<0.000000e+00> : vector<8x8xf32>
    %85 = tpu.matmul %83, %84, %cst_35 {dimension_numbers = #tpu.dot_dimension_numbers<[1], [1], [0], [0], [0, 0, 1, 0], [], []>} : vector<8x8xf32>, vector<8x8xf32>, vector<8x8xf32> -> vector<8x8xf32>
    %cst_36 = arith.constant 0.353553385 : f32
    %86 = vector.broadcast %cst_36 : f32 to vector<8x8xf32>
    %87 = arith.mulf %85, %86 : vector<8x8xf32>
    %88 = vector.broadcast %75 : vector<1x8xf32> to vector<8x8xf32>
    %89 = arith.addf %87, %88 : vector<8x8xf32>
    %90 = vector.extract_strided_slice %45 {offsets = [8, 16], sizes = [8, 8], strides = [1, 1]} : vector<16x96xf32> to vector<8x8xf32>
    %91 = vector.extract_strided_slice %45 {offsets = [8, 48], sizes = [8, 8], strides = [1, 1]} : vector<16x96xf32> to vector<8x8xf32>
    %cst_37 = arith.constant dense<0.000000e+00> : vector<8x8xf32>
    %92 = tpu.matmul %90, %91, %cst_37 {dimension_numbers = #tpu.dot_dimension_numbers<[1], [1], [0], [0], [0, 0, 1, 0], [], []>} : vector<8x8xf32>, vector<8x8xf32>, vector<8x8xf32> -> vector<8x8xf32>
    %cst_38 = arith.constant 0.353553385 : f32
    %93 = vector.broadcast %cst_38 : f32 to vector<8x8xf32>
    %94 = arith.mulf %92, %93 : vector<8x8xf32>
    %95 = vector.broadcast %75 : vector<1x8xf32> to vector<8x8xf32>
    %96 = arith.addf %94, %95 : vector<8x8xf32>
    %97 = vector.extract_strided_slice %45 {offsets = [8, 24], sizes = [8, 8], strides = [1, 1]} : vector<16x96xf32> to vector<8x8xf32>
    %98 = vector.extract_strided_slice %45 {offsets = [8, 56], sizes = [8, 8], strides = [1, 1]} : vector<16x96xf32> to vector<8x8xf32>
    %cst_39 = arith.constant dense<0.000000e+00> : vector<8x8xf32>
    %99 = tpu.matmul %97, %98, %cst_39 {dimension_numbers = #tpu.dot_dimension_numbers<[1], [1], [0], [0], [0, 0, 1, 0], [], []>} : vector<8x8xf32>, vector<8x8xf32>, vector<8x8xf32> -> vector<8x8xf32>
    %cst_40 = arith.constant 0.353553385 : f32
    %100 = vector.broadcast %cst_40 : f32 to vector<8x8xf32>
    %101 = arith.mulf %99, %100 : vector<8x8xf32>
    %102 = vector.broadcast %75 : vector<1x8xf32> to vector<8x8xf32>
    %103 = arith.addf %101, %102 : vector<8x8xf32>
    %104 = tpu.concatenate %53, %60, %67, %74, %82, %89, %96, %103 in 0 : vector<8x8xf32>, vector<8x8xf32>, vector<8x8xf32>, vector<8x8xf32>, vector<8x8xf32>, vector<8x8xf32>, vector<8x8xf32>, vector<8x8xf32> -> vector<64x8xf32>
    %cst_41 = arith.constant dense<0xFF800000> : vector<64xf32>
    %105 = vector.multi_reduction <maximumf>, %104, %cst_41 [1] : vector<64x8xf32> to vector<64xf32>
    %106 = vector.shape_cast %105 : vector<64xf32> to vector<64x1xf32>
    %107 = vector.broadcast %106 : vector<64x1xf32> to vector<64x8xf32>
    %108 = arith.subf %104, %107 : vector<64x8xf32>
    %109 = math.exp %108 : vector<64x8xf32>
    %cst_42 = arith.constant dense<0.000000e+00> : vector<64xf32>
    %110 = vector.multi_reduction <add>, %109, %cst_42 [1] : vector<64x8xf32> to vector<64xf32>
    %111 = vector.shape_cast %110 : vector<64xf32> to vector<64x1xf32>
    %112 = tpu.reciprocal %111 {approx = true} : vector<64x1xf32> -> vector<64x1xf32>
    %113 = vector.broadcast %112 : vector<64x1xf32> to vector<64x8xf32>
    %114 = arith.mulf %109, %113 : vector<64x8xf32>
    %115 = vector.extract_strided_slice %114 {offsets = [0, 0], sizes = [8, 8], strides = [1, 1]} : vector<64x8xf32> to vector<8x8xf32>
    %116 = vector.extract_strided_slice %45 {offsets = [0, 64], sizes = [8, 8], strides = [1, 1]} : vector<16x96xf32> to vector<8x8xf32>
    %cst_43 = arith.constant dense<0.000000e+00> : vector<8x8xf32>
    %117 = tpu.matmul %115, %116, %cst_43 {dimension_numbers = #tpu.dot_dimension_numbers<[1], [0], [0], [1], [0, 0, 1, 1], [], []>} : vector<8x8xf32>, vector<8x8xf32>, vector<8x8xf32> -> vector<8x8xf32>
    %118 = vector.extract_strided_slice %114 {offsets = [8, 0], sizes = [8, 8], strides = [1, 1]} : vector<64x8xf32> to vector<8x8xf32>
    %119 = vector.extract_strided_slice %45 {offsets = [0, 72], sizes = [8, 8], strides = [1, 1]} : vector<16x96xf32> to vector<8x8xf32>
    %cst_44 = arith.constant dense<0.000000e+00> : vector<8x8xf32>
    %120 = tpu.matmul %118, %119, %cst_44 {dimension_numbers = #tpu.dot_dimension_numbers<[1], [0], [0], [1], [0, 0, 1, 1], [], []>} : vector<8x8xf32>, vector<8x8xf32>, vector<8x8xf32> -> vector<8x8xf32>
    %121 = vector.extract_strided_slice %114 {offsets = [16, 0], sizes = [8, 8], strides = [1, 1]} : vector<64x8xf32> to vector<8x8xf32>
    %122 = vector.extract_strided_slice %45 {offsets = [0, 80], sizes = [8, 8], strides = [1, 1]} : vector<16x96xf32> to vector<8x8xf32>
    %cst_45 = arith.constant dense<0.000000e+00> : vector<8x8xf32>
    %123 = tpu.matmul %121, %122, %cst_45 {dimension_numbers = #tpu.dot_dimension_numbers<[1], [0], [0], [1], [0, 0, 1, 1], [], []>} : vector<8x8xf32>, vector<8x8xf32>, vector<8x8xf32> -> vector<8x8xf32>
    %124 = vector.extract_strided_slice %114 {offsets = [24, 0], sizes = [8, 8], strides = [1, 1]} : vector<64x8xf32> to vector<8x8xf32>
    %125 = vector.extract_strided_slice %45 {offsets = [0, 88], sizes = [8, 8], strides = [1, 1]} : vector<16x96xf32> to vector<8x8xf32>
    %cst_46 = arith.constant dense<0.000000e+00> : vector<8x8xf32>
    %126 = tpu.matmul %124, %125, %cst_46 {dimension_numbers = #tpu.dot_dimension_numbers<[1], [0], [0], [1], [0, 0, 1, 1], [], []>} : vector<8x8xf32>, vector<8x8xf32>, vector<8x8xf32> -> vector<8x8xf32>
    %127 = tpu.concatenate %117, %120, %123, %126 in 1 : vector<8x8xf32>, vector<8x8xf32>, vector<8x8xf32>, vector<8x8xf32> -> vector<8x32xf32>
    %128 = vector.extract_strided_slice %114 {offsets = [32, 0], sizes = [8, 8], strides = [1, 1]} : vector<64x8xf32> to vector<8x8xf32>
    %129 = vector.extract_strided_slice %45 {offsets = [8, 64], sizes = [8, 8], strides = [1, 1]} : vector<16x96xf32> to vector<8x8xf32>
    %cst_47 = arith.constant dense<0.000000e+00> : vector<8x8xf32>
    %130 = tpu.matmul %128, %129, %cst_47 {dimension_numbers = #tpu.dot_dimension_numbers<[1], [0], [0], [1], [0, 0, 1, 1], [], []>} : vector<8x8xf32>, vector<8x8xf32>, vector<8x8xf32> -> vector<8x8xf32>
    %131 = vector.extract_strided_slice %114 {offsets = [40, 0], sizes = [8, 8], strides = [1, 1]} : vector<64x8xf32> to vector<8x8xf32>
    %132 = vector.extract_strided_slice %45 {offsets = [8, 72], sizes = [8, 8], strides = [1, 1]} : vector<16x96xf32> to vector<8x8xf32>
    %cst_48 = arith.constant dense<0.000000e+00> : vector<8x8xf32>
    %133 = tpu.matmul %131, %132, %cst_48 {dimension_numbers = #tpu.dot_dimension_numbers<[1], [0], [0], [1], [0, 0, 1, 1], [], []>} : vector<8x8xf32>, vector<8x8xf32>, vector<8x8xf32> -> vector<8x8xf32>
    %134 = vector.extract_strided_slice %114 {offsets = [48, 0], sizes = [8, 8], strides = [1, 1]} : vector<64x8xf32> to vector<8x8xf32>
    %135 = vector.extract_strided_slice %45 {offsets = [8, 80], sizes = [8, 8], strides = [1, 1]} : vector<16x96xf32> to vector<8x8xf32>
    %cst_49 = arith.constant dense<0.000000e+00> : vector<8x8xf32>
    %136 = tpu.matmul %134, %135, %cst_49 {dimension_numbers = #tpu.dot_dimension_numbers<[1], [0], [0], [1], [0, 0, 1, 1], [], []>} : vector<8x8xf32>, vector<8x8xf32>, vector<8x8xf32> -> vector<8x8xf32>
    %137 = vector.extract_strided_slice %114 {offsets = [56, 0], sizes = [8, 8], strides = [1, 1]} : vector<64x8xf32> to vector<8x8xf32>
    %138 = vector.extract_strided_slice %45 {offsets = [8, 88], sizes = [8, 8], strides = [1, 1]} : vector<16x96xf32> to vector<8x8xf32>
    %cst_50 = arith.constant dense<0.000000e+00> : vector<8x8xf32>
    %139 = tpu.matmul %137, %138, %cst_50 {dimension_numbers = #tpu.dot_dimension_numbers<[1], [0], [0], [1], [0, 0, 1, 1], [], []>} : vector<8x8xf32>, vector<8x8xf32>, vector<8x8xf32> -> vector<8x8xf32>
    %140 = tpu.concatenate %130, %133, %136, %139 in 1 : vector<8x8xf32>, vector<8x8xf32>, vector<8x8xf32>, vector<8x8xf32> -> vector<8x32xf32>
    %141 = tpu.concatenate %127, %140 in 0 : vector<8x32xf32>, vector<8x32xf32> -> vector<16x32xf32>
    %c0_51 = arith.constant 0 : index
    %c0_52 = arith.constant 0 : index
    %c0_53 = arith.constant 0 : index
    %142 = vector.load %arg8[%c0_51, %c0_52, %c0_53] : memref<2x32x32xf32, #tpu.memory_space<vmem>>, vector<1x32x32xf32>
    %143 = vector.shape_cast %142 : vector<1x32x32xf32> to vector<32x32xf32>
    %cst_54 = arith.constant dense<0.000000e+00> : vector<16x32xf32>
    %144 = tpu.matmul %141, %143, %cst_54 {dimension_numbers = #tpu.dot_dimension_numbers<[1], [0], [0], [1], [0, 0, 1, 1], [], []>} : vector<16x32xf32>, vector<32x32xf32>, vector<16x32xf32> -> vector<16x32xf32>
    %c0_55 = arith.constant 0 : index
    %c0_56 = arith.constant 0 : index
    %c0_57 = arith.constant 0 : index
    %145 = vector.load %arg9[%c0_55, %c0_56, %c0_57] : memref<2x1x32xf32, #tpu.memory_space<vmem>>, vector<1x1x32xf32>
    %146 = vector.shape_cast %145 : vector<1x1x32xf32> to vector<1x32xf32>
    %147 = vector.broadcast %146 : vector<1x32xf32> to vector<16x32xf32>
    %148 = arith.addf %144, %147 : vector<16x32xf32>
    %149 = arith.addf %148, %33 : vector<16x32xf32>
    %c0_58 = arith.constant 0 : index
    %c0_59 = arith.constant 0 : index
    %c0_60 = arith.constant 0 : index
    %150 = vector.load %arg10[%c0_58, %c0_59, %c0_60] : memref<2x1x32xf32, #tpu.memory_space<vmem>>, vector<1x1x32xf32>
    %151 = vector.shape_cast %150 : vector<1x1x32xf32> to vector<1x32xf32>
    %c0_61 = arith.constant 0 : index
    %c0_62 = arith.constant 0 : index
    %c0_63 = arith.constant 0 : index
    %152 = vector.load %arg11[%c0_61, %c0_62, %c0_63] : memref<2x1x32xf32, #tpu.memory_space<vmem>>, vector<1x1x32xf32>
    %153 = vector.shape_cast %152 : vector<1x1x32xf32> to vector<1x32xf32>
    %cst_64 = arith.constant dense<0.000000e+00> : vector<16xf32>
    %154 = vector.multi_reduction <add>, %149, %cst_64 [1] : vector<16x32xf32> to vector<16xf32>
    %155 = vector.shape_cast %154 : vector<16xf32> to vector<16x1xf32>
    %cst_65 = arith.constant 3.200000e+01 : f32
    %156 = vector.broadcast %cst_65 : f32 to vector<16x1xf32>
    %157 = arith.divf %155, %156 : vector<16x1xf32>
    %158 = arith.mulf %149, %149 : vector<16x32xf32>
    %cst_66 = arith.constant dense<0.000000e+00> : vector<16xf32>
    %159 = vector.multi_reduction <add>, %158, %cst_66 [1] : vector<16x32xf32> to vector<16xf32>
    %160 = vector.shape_cast %159 : vector<16xf32> to vector<16x1xf32>
    %cst_67 = arith.constant 3.200000e+01 : f32
    %161 = vector.broadcast %cst_67 : f32 to vector<16x1xf32>
    %162 = arith.divf %160, %161 : vector<16x1xf32>
    %163 = arith.mulf %157, %157 : vector<16x1xf32>
    %164 = arith.subf %162, %163 : vector<16x1xf32>
    %165 = vector.broadcast %157 : vector<16x1xf32> to vector<16x32xf32>
    %166 = arith.subf %149, %165 : vector<16x32xf32>
    %cst_68 = arith.constant 9.99999996E-13 : f32
    %167 = vector.broadcast %cst_68 : f32 to vector<16x1xf32>
    %168 = arith.addf %164, %167 : vector<16x1xf32>
    %169 = math.rsqrt %168 : vector<16x1xf32>
    %170 = vector.broadcast %169 : vector<16x1xf32> to vector<16x32xf32>
    %171 = arith.mulf %166, %170 : vector<16x32xf32>
    %172 = vector.broadcast %151 : vector<1x32xf32> to vector<16x32xf32>
    %173 = arith.mulf %171, %172 : vector<16x32xf32>
    %174 = vector.broadcast %153 : vector<1x32xf32> to vector<16x32xf32>
    %175 = arith.addf %173, %174 : vector<16x32xf32>
    %c0_69 = arith.constant 0 : index
    %c0_70 = arith.constant 0 : index
    %c0_71 = arith.constant 0 : index
    %176 = vector.load %arg12[%c0_69, %c0_70, %c0_71] : memref<2x32x64xf32, #tpu.memory_space<vmem>>, vector<1x32x64xf32>
    %177 = vector.shape_cast %176 : vector<1x32x64xf32> to vector<32x64xf32>
    %cst_72 = arith.constant dense<0.000000e+00> : vector<16x64xf32>
    %178 = tpu.matmul %175, %177, %cst_72 {dimension_numbers = #tpu.dot_dimension_numbers<[1], [0], [0], [1], [0, 0, 1, 1], [], []>} : vector<16x32xf32>, vector<32x64xf32>, vector<16x64xf32> -> vector<16x64xf32>
    %c0_73 = arith.constant 0 : index
    %c0_74 = arith.constant 0 : index
    %c0_75 = arith.constant 0 : index
    %179 = vector.load %arg13[%c0_73, %c0_74, %c0_75] : memref<2x1x64xf32, #tpu.memory_space<vmem>>, vector<1x1x64xf32>
    %180 = vector.shape_cast %179 : vector<1x1x64xf32> to vector<1x64xf32>
    %181 = vector.broadcast %180 : vector<1x64xf32> to vector<16x64xf32>
    %182 = arith.addf %178, %181 : vector<16x64xf32>
    %cst_76 = arith.constant 5.000000e-01 : f32
    %183 = vector.broadcast %cst_76 : f32 to vector<16x64xf32>
    %184 = arith.mulf %183, %182 : vector<16x64xf32>
    %cst_77 = arith.constant 0.707106769 : f32
    %185 = vector.broadcast %cst_77 : f32 to vector<16x64xf32>
    %186 = arith.mulf %182, %185 : vector<16x64xf32>
    %187 = math.erf %186 : vector<16x64xf32>
    %cst_78 = arith.constant 1.000000e+00 : f32
    %188 = vector.broadcast %cst_78 : f32 to vector<16x64xf32>
    %189 = arith.addf %188, %187 : vector<16x64xf32>
    %190 = arith.mulf %184, %189 : vector<16x64xf32>
    %c0_79 = arith.constant 0 : index
    %c0_80 = arith.constant 0 : index
    %c0_81 = arith.constant 0 : index
    %191 = vector.load %arg14[%c0_79, %c0_80, %c0_81] : memref<2x64x32xf32, #tpu.memory_space<vmem>>, vector<1x64x32xf32>
    %192 = vector.shape_cast %191 : vector<1x64x32xf32> to vector<64x32xf32>
    %cst_82 = arith.constant dense<0.000000e+00> : vector<16x32xf32>
    %193 = tpu.matmul %190, %192, %cst_82 {dimension_numbers = #tpu.dot_dimension_numbers<[1], [0], [0], [1], [0, 0, 1, 1], [], []>} : vector<16x64xf32>, vector<64x32xf32>, vector<16x32xf32> -> vector<16x32xf32>
    %c0_83 = arith.constant 0 : index
    %c0_84 = arith.constant 0 : index
    %c0_85 = arith.constant 0 : index
    %194 = vector.load %arg15[%c0_83, %c0_84, %c0_85] : memref<2x1x32xf32, #tpu.memory_space<vmem>>, vector<1x1x32xf32>
    %195 = vector.shape_cast %194 : vector<1x1x32xf32> to vector<1x32xf32>
    %196 = vector.broadcast %195 : vector<1x32xf32> to vector<16x32xf32>
    %197 = arith.addf %193, %196 : vector<16x32xf32>
    %198 = arith.addf %197, %175 : vector<16x32xf32>
    %c0_86 = arith.constant 0 : index
    %c0_87 = arith.constant 0 : index
    %c0_88 = arith.constant 0 : index
    %199 = vector.load %arg16[%c0_86, %c0_87, %c0_88] : memref<2x1x32xf32, #tpu.memory_space<vmem>>, vector<1x1x32xf32>
    %200 = vector.shape_cast %199 : vector<1x1x32xf32> to vector<1x32xf32>
    %c0_89 = arith.constant 0 : index
    %c0_90 = arith.constant 0 : index
    %c0_91 = arith.constant 0 : index
    %201 = vector.load %arg17[%c0_89, %c0_90, %c0_91] : memref<2x1x32xf32, #tpu.memory_space<vmem>>, vector<1x1x32xf32>
    %202 = vector.shape_cast %201 : vector<1x1x32xf32> to vector<1x32xf32>
    %cst_92 = arith.constant dense<0.000000e+00> : vector<16xf32>
    %203 = vector.multi_reduction <add>, %198, %cst_92 [1] : vector<16x32xf32> to vector<16xf32>
    %204 = vector.shape_cast %203 : vector<16xf32> to vector<16x1xf32>
    %cst_93 = arith.constant 3.200000e+01 : f32
    %205 = vector.broadcast %cst_93 : f32 to vector<16x1xf32>
    %206 = arith.divf %204, %205 : vector<16x1xf32>
    %207 = arith.mulf %198, %198 : vector<16x32xf32>
    %cst_94 = arith.constant dense<0.000000e+00> : vector<16xf32>
    %208 = vector.multi_reduction <add>, %207, %cst_94 [1] : vector<16x32xf32> to vector<16xf32>
    %209 = vector.shape_cast %208 : vector<16xf32> to vector<16x1xf32>
    %cst_95 = arith.constant 3.200000e+01 : f32
    %210 = vector.broadcast %cst_95 : f32 to vector<16x1xf32>
    %211 = arith.divf %209, %210 : vector<16x1xf32>
    %212 = arith.mulf %206, %206 : vector<16x1xf32>
    %213 = arith.subf %211, %212 : vector<16x1xf32>
    %214 = vector.broadcast %206 : vector<16x1xf32> to vector<16x32xf32>
    %215 = arith.subf %198, %214 : vector<16x32xf32>
    %cst_96 = arith.constant 9.99999996E-13 : f32
    %216 = vector.broadcast %cst_96 : f32 to vector<16x1xf32>
    %217 = arith.addf %213, %216 : vector<16x1xf32>
    %218 = math.rsqrt %217 : vector<16x1xf32>
    %219 = vector.broadcast %218 : vector<16x1xf32> to vector<16x32xf32>
    %220 = arith.mulf %215, %219 : vector<16x32xf32>
    %221 = vector.broadcast %200 : vector<1x32xf32> to vector<16x32xf32>
    %222 = arith.mulf %220, %221 : vector<16x32xf32>
    %223 = vector.broadcast %202 : vector<1x32xf32> to vector<16x32xf32>
    %224 = arith.addf %222, %223 : vector<16x32xf32>
    %c1 = arith.constant 1 : index
    %c0_97 = arith.constant 0 : index
    %c0_98 = arith.constant 0 : index
    %225 = vector.load %arg6[%c1, %c0_97, %c0_98] : memref<2x32x96xf32, #tpu.memory_space<vmem>>, vector<1x32x96xf32>
    %226 = vector.shape_cast %225 : vector<1x32x96xf32> to vector<32x96xf32>
    %cst_99 = arith.constant dense<0.000000e+00> : vector<16x96xf32>
    %227 = tpu.matmul %224, %226, %cst_99 {dimension_numbers = #tpu.dot_dimension_numbers<[1], [0], [0], [1], [0, 0, 1, 1], [], []>} : vector<16x32xf32>, vector<32x96xf32>, vector<16x96xf32> -> vector<16x96xf32>
    %c1_100 = arith.constant 1 : index
    %c0_101 = arith.constant 0 : index
    %c0_102 = arith.constant 0 : index
    %228 = vector.load %arg7[%c1_100, %c0_101, %c0_102] : memref<2x1x96xf32, #tpu.memory_space<vmem>>, vector<1x1x96xf32>
    %229 = vector.shape_cast %228 : vector<1x1x96xf32> to vector<1x96xf32>
    %230 = vector.broadcast %229 : vector<1x96xf32> to vector<16x96xf32>
    %231 = arith.addf %227, %230 : vector<16x96xf32>
    %232 = vector.extract_strided_slice %38 {offsets = [0, 0], sizes = [1, 8], strides = [1, 1]} : vector<2x8xf32> to vector<1x8xf32>
    %233 = vector.extract_strided_slice %231 {offsets = [0, 0], sizes = [8, 8], strides = [1, 1]} : vector<16x96xf32> to vector<8x8xf32>
    %234 = vector.extract_strided_slice %231 {offsets = [0, 32], sizes = [8, 8], strides = [1, 1]} : vector<16x96xf32> to vector<8x8xf32>
    %cst_103 = arith.constant dense<0.000000e+00> : vector<8x8xf32>
    %235 = tpu.matmul %233, %234, %cst_103 {dimension_numbers = #tpu.dot_dimension_numbers<[1], [1], [0], [0], [0, 0, 1, 0], [], []>} : vector<8x8xf32>, vector<8x8xf32>, vector<8x8xf32> -> vector<8x8xf32>
    %cst_104 = arith.constant 0.353553385 : f32
    %236 = vector.broadcast %cst_104 : f32 to vector<8x8xf32>
    %237 = arith.mulf %235, %236 : vector<8x8xf32>
    %238 = vector.broadcast %232 : vector<1x8xf32> to vector<8x8xf32>
    %239 = arith.addf %237, %238 : vector<8x8xf32>
    %240 = vector.extract_strided_slice %231 {offsets = [0, 8], sizes = [8, 8], strides = [1, 1]} : vector<16x96xf32> to vector<8x8xf32>
    %241 = vector.extract_strided_slice %231 {offsets = [0, 40], sizes = [8, 8], strides = [1, 1]} : vector<16x96xf32> to vector<8x8xf32>
    %cst_105 = arith.constant dense<0.000000e+00> : vector<8x8xf32>
    %242 = tpu.matmul %240, %241, %cst_105 {dimension_numbers = #tpu.dot_dimension_numbers<[1], [1], [0], [0], [0, 0, 1, 0], [], []>} : vector<8x8xf32>, vector<8x8xf32>, vector<8x8xf32> -> vector<8x8xf32>
    %cst_106 = arith.constant 0.353553385 : f32
    %243 = vector.broadcast %cst_106 : f32 to vector<8x8xf32>
    %244 = arith.mulf %242, %243 : vector<8x8xf32>
    %245 = vector.broadcast %232 : vector<1x8xf32> to vector<8x8xf32>
    %246 = arith.addf %244, %245 : vector<8x8xf32>
    %247 = vector.extract_strided_slice %231 {offsets = [0, 16], sizes = [8, 8], strides = [1, 1]} : vector<16x96xf32> to vector<8x8xf32>
    %248 = vector.extract_strided_slice %231 {offsets = [0, 48], sizes = [8, 8], strides = [1, 1]} : vector<16x96xf32> to vector<8x8xf32>
    %cst_107 = arith.constant dense<0.000000e+00> : vector<8x8xf32>
    %249 = tpu.matmul %247, %248, %cst_107 {dimension_numbers = #tpu.dot_dimension_numbers<[1], [1], [0], [0], [0, 0, 1, 0], [], []>} : vector<8x8xf32>, vector<8x8xf32>, vector<8x8xf32> -> vector<8x8xf32>
    %cst_108 = arith.constant 0.353553385 : f32
    %250 = vector.broadcast %cst_108 : f32 to vector<8x8xf32>
    %251 = arith.mulf %249, %250 : vector<8x8xf32>
    %252 = vector.broadcast %232 : vector<1x8xf32> to vector<8x8xf32>
    %253 = arith.addf %251, %252 : vector<8x8xf32>
    %254 = vector.extract_strided_slice %231 {offsets = [0, 24], sizes = [8, 8], strides = [1, 1]} : vector<16x96xf32> to vector<8x8xf32>
    %255 = vector.extract_strided_slice %231 {offsets = [0, 56], sizes = [8, 8], strides = [1, 1]} : vector<16x96xf32> to vector<8x8xf32>
    %cst_109 = arith.constant dense<0.000000e+00> : vector<8x8xf32>
    %256 = tpu.matmul %254, %255, %cst_109 {dimension_numbers = #tpu.dot_dimension_numbers<[1], [1], [0], [0], [0, 0, 1, 0], [], []>} : vector<8x8xf32>, vector<8x8xf32>, vector<8x8xf32> -> vector<8x8xf32>
    %cst_110 = arith.constant 0.353553385 : f32
    %257 = vector.broadcast %cst_110 : f32 to vector<8x8xf32>
    %258 = arith.mulf %256, %257 : vector<8x8xf32>
    %259 = vector.broadcast %232 : vector<1x8xf32> to vector<8x8xf32>
    %260 = arith.addf %258, %259 : vector<8x8xf32>
    %261 = vector.extract_strided_slice %38 {offsets = [1, 0], sizes = [1, 8], strides = [1, 1]} : vector<2x8xf32> to vector<1x8xf32>
    %262 = vector.extract_strided_slice %231 {offsets = [8, 0], sizes = [8, 8], strides = [1, 1]} : vector<16x96xf32> to vector<8x8xf32>
    %263 = vector.extract_strided_slice %231 {offsets = [8, 32], sizes = [8, 8], strides = [1, 1]} : vector<16x96xf32> to vector<8x8xf32>
    %cst_111 = arith.constant dense<0.000000e+00> : vector<8x8xf32>
    %264 = tpu.matmul %262, %263, %cst_111 {dimension_numbers = #tpu.dot_dimension_numbers<[1], [1], [0], [0], [0, 0, 1, 0], [], []>} : vector<8x8xf32>, vector<8x8xf32>, vector<8x8xf32> -> vector<8x8xf32>
    %cst_112 = arith.constant 0.353553385 : f32
    %265 = vector.broadcast %cst_112 : f32 to vector<8x8xf32>
    %266 = arith.mulf %264, %265 : vector<8x8xf32>
    %267 = vector.broadcast %261 : vector<1x8xf32> to vector<8x8xf32>
    %268 = arith.addf %266, %267 : vector<8x8xf32>
    %269 = vector.extract_strided_slice %231 {offsets = [8, 8], sizes = [8, 8], strides = [1, 1]} : vector<16x96xf32> to vector<8x8xf32>
    %270 = vector.extract_strided_slice %231 {offsets = [8, 40], sizes = [8, 8], strides = [1, 1]} : vector<16x96xf32> to vector<8x8xf32>
    %cst_113 = arith.constant dense<0.000000e+00> : vector<8x8xf32>
    %271 = tpu.matmul %269, %270, %cst_113 {dimension_numbers = #tpu.dot_dimension_numbers<[1], [1], [0], [0], [0, 0, 1, 0], [], []>} : vector<8x8xf32>, vector<8x8xf32>, vector<8x8xf32> -> vector<8x8xf32>
    %cst_114 = arith.constant 0.353553385 : f32
    %272 = vector.broadcast %cst_114 : f32 to vector<8x8xf32>
    %273 = arith.mulf %271, %272 : vector<8x8xf32>
    %274 = vector.broadcast %261 : vector<1x8xf32> to vector<8x8xf32>
    %275 = arith.addf %273, %274 : vector<8x8xf32>
    %276 = vector.extract_strided_slice %231 {offsets = [8, 16], sizes = [8, 8], strides = [1, 1]} : vector<16x96xf32> to vector<8x8xf32>
    %277 = vector.extract_strided_slice %231 {offsets = [8, 48], sizes = [8, 8], strides = [1, 1]} : vector<16x96xf32> to vector<8x8xf32>
    %cst_115 = arith.constant dense<0.000000e+00> : vector<8x8xf32>
    %278 = tpu.matmul %276, %277, %cst_115 {dimension_numbers = #tpu.dot_dimension_numbers<[1], [1], [0], [0], [0, 0, 1, 0], [], []>} : vector<8x8xf32>, vector<8x8xf32>, vector<8x8xf32> -> vector<8x8xf32>
    %cst_116 = arith.constant 0.353553385 : f32
    %279 = vector.broadcast %cst_116 : f32 to vector<8x8xf32>
    %280 = arith.mulf %278, %279 : vector<8x8xf32>
    %281 = vector.broadcast %261 : vector<1x8xf32> to vector<8x8xf32>
    %282 = arith.addf %280, %281 : vector<8x8xf32>
    %283 = vector.extract_strided_slice %231 {offsets = [8, 24], sizes = [8, 8], strides = [1, 1]} : vector<16x96xf32> to vector<8x8xf32>
    %284 = vector.extract_strided_slice %231 {offsets = [8, 56], sizes = [8, 8], strides = [1, 1]} : vector<16x96xf32> to vector<8x8xf32>
    %cst_117 = arith.constant dense<0.000000e+00> : vector<8x8xf32>
    %285 = tpu.matmul %283, %284, %cst_117 {dimension_numbers = #tpu.dot_dimension_numbers<[1], [1], [0], [0], [0, 0, 1, 0], [], []>} : vector<8x8xf32>, vector<8x8xf32>, vector<8x8xf32> -> vector<8x8xf32>
    %cst_118 = arith.constant 0.353553385 : f32
    %286 = vector.broadcast %cst_118 : f32 to vector<8x8xf32>
    %287 = arith.mulf %285, %286 : vector<8x8xf32>
    %288 = vector.broadcast %261 : vector<1x8xf32> to vector<8x8xf32>
    %289 = arith.addf %287, %288 : vector<8x8xf32>
    %290 = tpu.concatenate %239, %246, %253, %260, %268, %275, %282, %289 in 0 : vector<8x8xf32>, vector<8x8xf32>, vector<8x8xf32>, vector<8x8xf32>, vector<8x8xf32>, vector<8x8xf32>, vector<8x8xf32>, vector<8x8xf32> -> vector<64x8xf32>
    %cst_119 = arith.constant dense<0xFF800000> : vector<64xf32>
    %291 = vector.multi_reduction <maximumf>, %290, %cst_119 [1] : vector<64x8xf32> to vector<64xf32>
    %292 = vector.shape_cast %291 : vector<64xf32> to vector<64x1xf32>
    %293 = vector.broadcast %292 : vector<64x1xf32> to vector<64x8xf32>
    %294 = arith.subf %290, %293 : vector<64x8xf32>
    %295 = math.exp %294 : vector<64x8xf32>
    %cst_120 = arith.constant dense<0.000000e+00> : vector<64xf32>
    %296 = vector.multi_reduction <add>, %295, %cst_120 [1] : vector<64x8xf32> to vector<64xf32>
    %297 = vector.shape_cast %296 : vector<64xf32> to vector<64x1xf32>
    %298 = tpu.reciprocal %297 {approx = true} : vector<64x1xf32> -> vector<64x1xf32>
    %299 = vector.broadcast %298 : vector<64x1xf32> to vector<64x8xf32>
    %300 = arith.mulf %295, %299 : vector<64x8xf32>
    %301 = vector.extract_strided_slice %300 {offsets = [0, 0], sizes = [8, 8], strides = [1, 1]} : vector<64x8xf32> to vector<8x8xf32>
    %302 = vector.extract_strided_slice %231 {offsets = [0, 64], sizes = [8, 8], strides = [1, 1]} : vector<16x96xf32> to vector<8x8xf32>
    %cst_121 = arith.constant dense<0.000000e+00> : vector<8x8xf32>
    %303 = tpu.matmul %301, %302, %cst_121 {dimension_numbers = #tpu.dot_dimension_numbers<[1], [0], [0], [1], [0, 0, 1, 1], [], []>} : vector<8x8xf32>, vector<8x8xf32>, vector<8x8xf32> -> vector<8x8xf32>
    %304 = vector.extract_strided_slice %300 {offsets = [8, 0], sizes = [8, 8], strides = [1, 1]} : vector<64x8xf32> to vector<8x8xf32>
    %305 = vector.extract_strided_slice %231 {offsets = [0, 72], sizes = [8, 8], strides = [1, 1]} : vector<16x96xf32> to vector<8x8xf32>
    %cst_122 = arith.constant dense<0.000000e+00> : vector<8x8xf32>
    %306 = tpu.matmul %304, %305, %cst_122 {dimension_numbers = #tpu.dot_dimension_numbers<[1], [0], [0], [1], [0, 0, 1, 1], [], []>} : vector<8x8xf32>, vector<8x8xf32>, vector<8x8xf32> -> vector<8x8xf32>
    %307 = vector.extract_strided_slice %300 {offsets = [16, 0], sizes = [8, 8], strides = [1, 1]} : vector<64x8xf32> to vector<8x8xf32>
    %308 = vector.extract_strided_slice %231 {offsets = [0, 80], sizes = [8, 8], strides = [1, 1]} : vector<16x96xf32> to vector<8x8xf32>
    %cst_123 = arith.constant dense<0.000000e+00> : vector<8x8xf32>
    %309 = tpu.matmul %307, %308, %cst_123 {dimension_numbers = #tpu.dot_dimension_numbers<[1], [0], [0], [1], [0, 0, 1, 1], [], []>} : vector<8x8xf32>, vector<8x8xf32>, vector<8x8xf32> -> vector<8x8xf32>
    %310 = vector.extract_strided_slice %300 {offsets = [24, 0], sizes = [8, 8], strides = [1, 1]} : vector<64x8xf32> to vector<8x8xf32>
    %311 = vector.extract_strided_slice %231 {offsets = [0, 88], sizes = [8, 8], strides = [1, 1]} : vector<16x96xf32> to vector<8x8xf32>
    %cst_124 = arith.constant dense<0.000000e+00> : vector<8x8xf32>
    %312 = tpu.matmul %310, %311, %cst_124 {dimension_numbers = #tpu.dot_dimension_numbers<[1], [0], [0], [1], [0, 0, 1, 1], [], []>} : vector<8x8xf32>, vector<8x8xf32>, vector<8x8xf32> -> vector<8x8xf32>
    %313 = tpu.concatenate %303, %306, %309, %312 in 1 : vector<8x8xf32>, vector<8x8xf32>, vector<8x8xf32>, vector<8x8xf32> -> vector<8x32xf32>
    %314 = vector.extract_strided_slice %300 {offsets = [32, 0], sizes = [8, 8], strides = [1, 1]} : vector<64x8xf32> to vector<8x8xf32>
    %315 = vector.extract_strided_slice %231 {offsets = [8, 64], sizes = [8, 8], strides = [1, 1]} : vector<16x96xf32> to vector<8x8xf32>
    %cst_125 = arith.constant dense<0.000000e+00> : vector<8x8xf32>
    %316 = tpu.matmul %314, %315, %cst_125 {dimension_numbers = #tpu.dot_dimension_numbers<[1], [0], [0], [1], [0, 0, 1, 1], [], []>} : vector<8x8xf32>, vector<8x8xf32>, vector<8x8xf32> -> vector<8x8xf32>
    %317 = vector.extract_strided_slice %300 {offsets = [40, 0], sizes = [8, 8], strides = [1, 1]} : vector<64x8xf32> to vector<8x8xf32>
    %318 = vector.extract_strided_slice %231 {offsets = [8, 72], sizes = [8, 8], strides = [1, 1]} : vector<16x96xf32> to vector<8x8xf32>
    %cst_126 = arith.constant dense<0.000000e+00> : vector<8x8xf32>
    %319 = tpu.matmul %317, %318, %cst_126 {dimension_numbers = #tpu.dot_dimension_numbers<[1], [0], [0], [1], [0, 0, 1, 1], [], []>} : vector<8x8xf32>, vector<8x8xf32>, vector<8x8xf32> -> vector<8x8xf32>
    %320 = vector.extract_strided_slice %300 {offsets = [48, 0], sizes = [8, 8], strides = [1, 1]} : vector<64x8xf32> to vector<8x8xf32>
    %321 = vector.extract_strided_slice %231 {offsets = [8, 80], sizes = [8, 8], strides = [1, 1]} : vector<16x96xf32> to vector<8x8xf32>
    %cst_127 = arith.constant dense<0.000000e+00> : vector<8x8xf32>
    %322 = tpu.matmul %320, %321, %cst_127 {dimension_numbers = #tpu.dot_dimension_numbers<[1], [0], [0], [1], [0, 0, 1, 1], [], []>} : vector<8x8xf32>, vector<8x8xf32>, vector<8x8xf32> -> vector<8x8xf32>
    %323 = vector.extract_strided_slice %300 {offsets = [56, 0], sizes = [8, 8], strides = [1, 1]} : vector<64x8xf32> to vector<8x8xf32>
    %324 = vector.extract_strided_slice %231 {offsets = [8, 88], sizes = [8, 8], strides = [1, 1]} : vector<16x96xf32> to vector<8x8xf32>
    %cst_128 = arith.constant dense<0.000000e+00> : vector<8x8xf32>
    %325 = tpu.matmul %323, %324, %cst_128 {dimension_numbers = #tpu.dot_dimension_numbers<[1], [0], [0], [1], [0, 0, 1, 1], [], []>} : vector<8x8xf32>, vector<8x8xf32>, vector<8x8xf32> -> vector<8x8xf32>
    %326 = tpu.concatenate %316, %319, %322, %325 in 1 : vector<8x8xf32>, vector<8x8xf32>, vector<8x8xf32>, vector<8x8xf32> -> vector<8x32xf32>
    %327 = tpu.concatenate %313, %326 in 0 : vector<8x32xf32>, vector<8x32xf32> -> vector<16x32xf32>
    %c1_129 = arith.constant 1 : index
    %c0_130 = arith.constant 0 : index
    %c0_131 = arith.constant 0 : index
    %328 = vector.load %arg8[%c1_129, %c0_130, %c0_131] : memref<2x32x32xf32, #tpu.memory_space<vmem>>, vector<1x32x32xf32>
    %329 = vector.shape_cast %328 : vector<1x32x32xf32> to vector<32x32xf32>
    %cst_132 = arith.constant dense<0.000000e+00> : vector<16x32xf32>
    %330 = tpu.matmul %327, %329, %cst_132 {dimension_numbers = #tpu.dot_dimension_numbers<[1], [0], [0], [1], [0, 0, 1, 1], [], []>} : vector<16x32xf32>, vector<32x32xf32>, vector<16x32xf32> -> vector<16x32xf32>
    %c1_133 = arith.constant 1 : index
    %c0_134 = arith.constant 0 : index
    %c0_135 = arith.constant 0 : index
    %331 = vector.load %arg9[%c1_133, %c0_134, %c0_135] : memref<2x1x32xf32, #tpu.memory_space<vmem>>, vector<1x1x32xf32>
    %332 = vector.shape_cast %331 : vector<1x1x32xf32> to vector<1x32xf32>
    %333 = vector.broadcast %332 : vector<1x32xf32> to vector<16x32xf32>
    %334 = arith.addf %330, %333 : vector<16x32xf32>
    %335 = arith.addf %334, %224 : vector<16x32xf32>
    %c1_136 = arith.constant 1 : index
    %c0_137 = arith.constant 0 : index
    %c0_138 = arith.constant 0 : index
    %336 = vector.load %arg10[%c1_136, %c0_137, %c0_138] : memref<2x1x32xf32, #tpu.memory_space<vmem>>, vector<1x1x32xf32>
    %337 = vector.shape_cast %336 : vector<1x1x32xf32> to vector<1x32xf32>
    %c1_139 = arith.constant 1 : index
    %c0_140 = arith.constant 0 : index
    %c0_141 = arith.constant 0 : index
    %338 = vector.load %arg11[%c1_139, %c0_140, %c0_141] : memref<2x1x32xf32, #tpu.memory_space<vmem>>, vector<1x1x32xf32>
    %339 = vector.shape_cast %338 : vector<1x1x32xf32> to vector<1x32xf32>
    %cst_142 = arith.constant dense<0.000000e+00> : vector<16xf32>
    %340 = vector.multi_reduction <add>, %335, %cst_142 [1] : vector<16x32xf32> to vector<16xf32>
    %341 = vector.shape_cast %340 : vector<16xf32> to vector<16x1xf32>
    %cst_143 = arith.constant 3.200000e+01 : f32
    %342 = vector.broadcast %cst_143 : f32 to vector<16x1xf32>
    %343 = arith.divf %341, %342 : vector<16x1xf32>
    %344 = arith.mulf %335, %335 : vector<16x32xf32>
    %cst_144 = arith.constant dense<0.000000e+00> : vector<16xf32>
    %345 = vector.multi_reduction <add>, %344, %cst_144 [1] : vector<16x32xf32> to vector<16xf32>
    %346 = vector.shape_cast %345 : vector<16xf32> to vector<16x1xf32>
    %cst_145 = arith.constant 3.200000e+01 : f32
    %347 = vector.broadcast %cst_145 : f32 to vector<16x1xf32>
    %348 = arith.divf %346, %347 : vector<16x1xf32>
    %349 = arith.mulf %343, %343 : vector<16x1xf32>
    %350 = arith.subf %348, %349 : vector<16x1xf32>
    %351 = vector.broadcast %343 : vector<16x1xf32> to vector<16x32xf32>
    %352 = arith.subf %335, %351 : vector<16x32xf32>
    %cst_146 = arith.constant 9.99999996E-13 : f32
    %353 = vector.broadcast %cst_146 : f32 to vector<16x1xf32>
    %354 = arith.addf %350, %353 : vector<16x1xf32>
    %355 = math.rsqrt %354 : vector<16x1xf32>
    %356 = vector.broadcast %355 : vector<16x1xf32> to vector<16x32xf32>
    %357 = arith.mulf %352, %356 : vector<16x32xf32>
    %358 = vector.broadcast %337 : vector<1x32xf32> to vector<16x32xf32>
    %359 = arith.mulf %357, %358 : vector<16x32xf32>
    %360 = vector.broadcast %339 : vector<1x32xf32> to vector<16x32xf32>
    %361 = arith.addf %359, %360 : vector<16x32xf32>
    %c1_147 = arith.constant 1 : index
    %c0_148 = arith.constant 0 : index
    %c0_149 = arith.constant 0 : index
    %362 = vector.load %arg12[%c1_147, %c0_148, %c0_149] : memref<2x32x64xf32, #tpu.memory_space<vmem>>, vector<1x32x64xf32>
    %363 = vector.shape_cast %362 : vector<1x32x64xf32> to vector<32x64xf32>
    %cst_150 = arith.constant dense<0.000000e+00> : vector<16x64xf32>
    %364 = tpu.matmul %361, %363, %cst_150 {dimension_numbers = #tpu.dot_dimension_numbers<[1], [0], [0], [1], [0, 0, 1, 1], [], []>} : vector<16x32xf32>, vector<32x64xf32>, vector<16x64xf32> -> vector<16x64xf32>
    %c1_151 = arith.constant 1 : index
    %c0_152 = arith.constant 0 : index
    %c0_153 = arith.constant 0 : index
    %365 = vector.load %arg13[%c1_151, %c0_152, %c0_153] : memref<2x1x64xf32, #tpu.memory_space<vmem>>, vector<1x1x64xf32>
    %366 = vector.shape_cast %365 : vector<1x1x64xf32> to vector<1x64xf32>
    %367 = vector.broadcast %366 : vector<1x64xf32> to vector<16x64xf32>
    %368 = arith.addf %364, %367 : vector<16x64xf32>
    %cst_154 = arith.constant 5.000000e-01 : f32
    %369 = vector.broadcast %cst_154 : f32 to vector<16x64xf32>
    %370 = arith.mulf %369, %368 : vector<16x64xf32>
    %cst_155 = arith.constant 0.707106769 : f32
    %371 = vector.broadcast %cst_155 : f32 to vector<16x64xf32>
    %372 = arith.mulf %368, %371 : vector<16x64xf32>
    %373 = math.erf %372 : vector<16x64xf32>
    %cst_156 = arith.constant 1.000000e+00 : f32
    %374 = vector.broadcast %cst_156 : f32 to vector<16x64xf32>
    %375 = arith.addf %374, %373 : vector<16x64xf32>
    %376 = arith.mulf %370, %375 : vector<16x64xf32>
    %c1_157 = arith.constant 1 : index
    %c0_158 = arith.constant 0 : index
    %c0_159 = arith.constant 0 : index
    %377 = vector.load %arg14[%c1_157, %c0_158, %c0_159] : memref<2x64x32xf32, #tpu.memory_space<vmem>>, vector<1x64x32xf32>
    %378 = vector.shape_cast %377 : vector<1x64x32xf32> to vector<64x32xf32>
    %cst_160 = arith.constant dense<0.000000e+00> : vector<16x32xf32>
    %379 = tpu.matmul %376, %378, %cst_160 {dimension_numbers = #tpu.dot_dimension_numbers<[1], [0], [0], [1], [0, 0, 1, 1], [], []>} : vector<16x64xf32>, vector<64x32xf32>, vector<16x32xf32> -> vector<16x32xf32>
    %c1_161 = arith.constant 1 : index
    %c0_162 = arith.constant 0 : index
    %c0_163 = arith.constant 0 : index
    %380 = vector.load %arg15[%c1_161, %c0_162, %c0_163] : memref<2x1x32xf32, #tpu.memory_space<vmem>>, vector<1x1x32xf32>
    %381 = vector.shape_cast %380 : vector<1x1x32xf32> to vector<1x32xf32>
    %382 = vector.broadcast %381 : vector<1x32xf32> to vector<16x32xf32>
    %383 = arith.addf %379, %382 : vector<16x32xf32>
    %384 = arith.addf %383, %361 : vector<16x32xf32>
    %c1_164 = arith.constant 1 : index
    %c0_165 = arith.constant 0 : index
    %c0_166 = arith.constant 0 : index
    %385 = vector.load %arg16[%c1_164, %c0_165, %c0_166] : memref<2x1x32xf32, #tpu.memory_space<vmem>>, vector<1x1x32xf32>
    %386 = vector.shape_cast %385 : vector<1x1x32xf32> to vector<1x32xf32>
    %c1_167 = arith.constant 1 : index
    %c0_168 = arith.constant 0 : index
    %c0_169 = arith.constant 0 : index
    %387 = vector.load %arg17[%c1_167, %c0_168, %c0_169] : memref<2x1x32xf32, #tpu.memory_space<vmem>>, vector<1x1x32xf32>
    %388 = vector.shape_cast %387 : vector<1x1x32xf32> to vector<1x32xf32>
    %cst_170 = arith.constant dense<0.000000e+00> : vector<16xf32>
    %389 = vector.multi_reduction <add>, %384, %cst_170 [1] : vector<16x32xf32> to vector<16xf32>
    %390 = vector.shape_cast %389 : vector<16xf32> to vector<16x1xf32>
    %cst_171 = arith.constant 3.200000e+01 : f32
    %391 = vector.broadcast %cst_171 : f32 to vector<16x1xf32>
    %392 = arith.divf %390, %391 : vector<16x1xf32>
    %393 = arith.mulf %384, %384 : vector<16x32xf32>
    %cst_172 = arith.constant dense<0.000000e+00> : vector<16xf32>
    %394 = vector.multi_reduction <add>, %393, %cst_172 [1] : vector<16x32xf32> to vector<16xf32>
    %395 = vector.shape_cast %394 : vector<16xf32> to vector<16x1xf32>
    %cst_173 = arith.constant 3.200000e+01 : f32
    %396 = vector.broadcast %cst_173 : f32 to vector<16x1xf32>
    %397 = arith.divf %395, %396 : vector<16x1xf32>
    %398 = arith.mulf %392, %392 : vector<16x1xf32>
    %399 = arith.subf %397, %398 : vector<16x1xf32>
    %400 = vector.broadcast %392 : vector<16x1xf32> to vector<16x32xf32>
    %401 = arith.subf %384, %400 : vector<16x32xf32>
    %cst_174 = arith.constant 9.99999996E-13 : f32
    %402 = vector.broadcast %cst_174 : f32 to vector<16x1xf32>
    %403 = arith.addf %399, %402 : vector<16x1xf32>
    %404 = math.rsqrt %403 : vector<16x1xf32>
    %405 = vector.broadcast %404 : vector<16x1xf32> to vector<16x32xf32>
    %406 = arith.mulf %401, %405 : vector<16x32xf32>
    %407 = vector.broadcast %386 : vector<1x32xf32> to vector<16x32xf32>
    %408 = arith.mulf %406, %407 : vector<16x32xf32>
    %409 = vector.broadcast %388 : vector<1x32xf32> to vector<16x32xf32>
    %410 = arith.addf %408, %409 : vector<16x32xf32>
    %411 = vector.extract_strided_slice %410 {offsets = [0, 0], sizes = [1, 32], strides = [1, 1]} : vector<16x32xf32> to vector<1x32xf32>
    %412 = vector.extract_strided_slice %410 {offsets = [8, 0], sizes = [1, 32], strides = [1, 1]} : vector<16x32xf32> to vector<1x32xf32>
    %413 = tpu.concatenate %411, %412 in 0 : vector<1x32xf32>, vector<1x32xf32> -> vector<2x32xf32>
    %c0_175 = arith.constant 0 : index
    %c0_176 = arith.constant 0 : index
    %414 = vector.load %arg18[%c0_175, %c0_176] : memref<32x32xf32, #tpu.memory_space<vmem>>, vector<32x32xf32>
    %cst_177 = arith.constant dense<0.000000e+00> : vector<2x32xf32>
    %415 = tpu.matmul %413, %414, %cst_177 {dimension_numbers = #tpu.dot_dimension_numbers<[1], [0], [0], [1], [0, 0, 1, 1], [], []>} : vector<2x32xf32>, vector<32x32xf32>, vector<2x32xf32> -> vector<2x32xf32>
    %c0_178 = arith.constant 0 : index
    %c0_179 = arith.constant 0 : index
    %416 = vector.load %arg19[%c0_178, %c0_179] : memref<1x32xf32, #tpu.memory_space<vmem>>, vector<1x32xf32>
    %417 = vector.broadcast %416 : vector<1x32xf32> to vector<2x32xf32>
    %418 = arith.addf %415, %417 : vector<2x32xf32>
    %419 = math.tanh %418 : vector<2x32xf32>
    %c0_180 = arith.constant 0 : index
    %c0_181 = arith.constant 0 : index
    %420 = vector.load %arg20[%c0_180, %c0_181] : memref<32x128xf32, #tpu.memory_space<vmem>>, vector<32x128xf32>
    %cst_182 = arith.constant dense<0.000000e+00> : vector<2x128xf32>
    %421 = tpu.matmul %419, %420, %cst_182 {dimension_numbers = #tpu.dot_dimension_numbers<[1], [0], [0], [1], [0, 0, 1, 1], [], []>} : vector<2x32xf32>, vector<32x128xf32>, vector<2x128xf32> -> vector<2x128xf32>
    %c0_183 = arith.constant 0 : index
    %c0_184 = arith.constant 0 : index
    %422 = vector.load %arg21[%c0_183, %c0_184] : memref<1x128xf32, #tpu.memory_space<vmem>>, vector<1x128xf32>
    %423 = vector.broadcast %422 : vector<1x128xf32> to vector<2x128xf32>
    %424 = arith.addf %421, %423 : vector<2x128xf32>
    %c0_185 = arith.constant 0 : index
    %c0_186 = arith.constant 0 : index
    %425 = vector.load %arg22[%c0_185, %c0_186] : memref<2x128xf32, #tpu.memory_space<vmem>>, vector<2x128xf32>
    tpu.vector_store %arg22[%c0_185, %c0_186], %424 {strides = array<i32>} : memref<2x128xf32, #tpu.memory_space<vmem>>, vector<2x128xf32>,
    return
  }
}

</mosaic_0001>

<bundles_post_ra>
// kernel: _lambda_.1
= control target key start
LH: loop header
LB: loop body
LE: loop exit
PB: predicated region body
PF: predicated region fallthrough
CT: control target
= control target key end

     0   :  { %s5716_s0 = inlined_call_operand.vmem [shape: s32[16,1], index: 0, kind: input, shape index: {}]   ;;  %s5717_s1 = inlined_call_operand.vmem [shape: f32[2,8], index: 1, kind: input, shape index: {}]   ;;  %s5718_s2 = inlined_call_operand.hbm [shape: f32[64,32], index: 2, kind: input, shape index: {}]   ;;  %s5719_s3 = inlined_call_operand.vmem [shape: f32[16,32], index: 3, kind: input, shape index: {}]   ;;  %s5720_s4 = inlined_call_operand.vmem [shape: f32[1,32], index: 4, kind: input, shape index: {}]   ;;  %s5721_s5 = inlined_call_operand.vmem [shape: f32[1,32], index: 5, kind: input, shape index: {}, may-alias: {5,19}]   ;;  %s5722_s6 = inlined_call_operand.hbm [shape: f32[2,32,96], index: 6, kind: input, shape index: {}]   ;;  %s5723_s7 = inlined_call_operand.vmem [shape: f32[2,1,96], index: 7, kind: input, shape index: {}]   ;;  %s5724_s8 = inlined_call_operand.hbm [shape: f32[2,32,32], index: 8, kind: input, shape index: {}]   ;;  %s5725_s9 = inlined_call_operand.vmem [shape: f32[2,1,32], index: 9, kind: input, shape index: {}, may-alias: {9,11,15,17}]   ;;  %s5726_s10 = inlined_call_operand.vmem [shape: f32[2,1,32], index: 10, kind: input, shape index: {}, may-alias: {10,16}]   ;;  %s5727_s11 = inlined_call_operand.vmem [shape: f32[2,1,32], index: 11, kind: input, shape index: {}, may-alias: {9,11,15,17}]   ;;  %s5728_s12 = inlined_call_operand.vmem [shape: f32[2,32,64], index: 12, kind: input, shape index: {}]   ;;  %s5729_s13 = inlined_call_operand.vmem [shape: f32[2,1,64], index: 13, kind: input, shape index: {}]   ;;  %s5730_s14 = inlined_call_operand.vmem [shape: f32[2,64,32], index: 14, kind: input, shape index: {}]   ;;  %s5731_s15 = inlined_call_operand.vmem [shape: f32[2,1,32], index: 15, kind: input, shape index: {}, may-alias: {9,11,15,17}]   ;;  %s5732_s16 = inlined_call_operand.vmem [shape: f32[2,1,32], index: 16, kind: input, shape index: {}, may-alias: {10,16}]   ;;  %s5733_s17 = inlined_call_operand.vmem [shape: f32[2,1,32], index: 17, kind: input, shape index: {}, may-alias: {9,11,15,17}]   ;;  %s5734_s18 = inlined_call_operand.hbm [shape: f32[32,32], index: 18, kind: input, shape index: {}]   ;;  %s5735_s19 = inlined_call_operand.vmem [shape: f32[1,32], index: 19, kind: input, shape index: {}, may-alias: {5,19}]   ;;  %s5736_s20 = inlined_call_operand.vmem [shape: f32[32,128], index: 20, kind: input, shape index: {}]   ;;  %s5737_s21 = inlined_call_operand.vmem [shape: f32[1,128], index: 21, kind: input, shape index: {}]   ;;  %s5738_s22 = inlined_call_operand.hbm [shape: f32[2,128], index: 22, kind: output, shape index: {}]  }
   0x1   :  { %5751 = sst [smem:[#allocation15_spill]] %s5716_s0 }
   0x2   :  { %5752 = sst [smem:[#allocation16_spill]] %s5717_s1 }
   0x3   :  { %5753 = sst [smem:[#allocation17_spill]] %s5718_s2 }
   0x4   :  { %5754 = sst [smem:[#allocation18_spill]] %s5719_s3 }
   0x5   :  { %5755 = sst [smem:[#allocation19_spill]] %s5720_s4 }
   0x6   :  { %5756 = sst [smem:[#allocation20_spill]] %s5721_s5 }
   0x7   :  { %5757 = sst [smem:[#allocation21_spill]] %s5722_s6 }
   0x8   :  { %27 = vsyncpa [#allocation3], 0 }
   0x9   :  { %28 = vsyncpa [#allocation6], 0 }
   0xa   :  { %29 = vsyncpa [#allocation9], 0 }
   0xb   :  { %30 = vsyncpa [#allocation4], 0  ;;  %s4976_s3 = smov [#allocation5]   ;;  %s4977_s29 = smov [#allocation2]  }
   0xc   :  { %s58_s28 = sshll.u32 %s4976_s3, 4  ;;  %s40_s30 = sshll.u32 %s4977_s29, 4  ;;  %s59_s28 = int_to_ptr.vmem [resolvable:$true] %s58_s28  ;;  %s41_s30 = int_to_ptr.vmem [resolvable:$true] %s40_s30 }
   0xd   :  { %s4876_s4 = scalar_lea.vmem %s59_s28, 1024  ;;  %p4881_p1 = scmp.lt.s32.totalorder %s59_s28, %s59_s28 }
   0xe   :  { %p4877_p0 = scmp.ne.s32.totalorder %s59_s28, %s4876_s4  ;;  %p4882_p2 = scmp.lt.s32.totalorder %s4876_s4, %s4876_s4 }
  0x10   :  { %p4883_p3 = por %p4882_p2, %p4881_p1 }
  0x12   :  { %p4884_p4 = pnand %p4883_p3, %p4877_p0 }
  0x14   :  { %4887 = shalt.err (!%p4884_p4)
}
  0x15   :  { %s4978_s0 = smov 128   ;;  %s5745_s23 = smov 8  }
  0x16   :  { %s5758_s24 = sld [smem:[#allocation21_spill]]  ;;  %s4896_s6 = scalar_lea.vmem %s41_s30, 1024 }
  0x17   :  { %p4897_p5 = scmp.ne.s32.totalorder %s41_s30, %s4896_s6  ;;  %p4901_p6 = scmp.lt.s32.totalorder %s41_s30, %s41_s30 }
  0x18   :  { %p4902_p7 = scmp.lt.s32.totalorder %s4896_s6, %s4896_s6 }
  0x1a   :  { %p4903_p8 = por %p4902_p7, %p4901_p6 }
  0x1c   :  { %64 = dma.hbm_to_vmem [thread:$0]  %s5758_s24, 1024, %s59_s28, [#allocation6], %s4978_s0, %s4978_s0, %s5745_s23  }
  0x1d   :  { %p4904_p9 = pnand %p4903_p8, %p4897_p5 }
  0x1f   :  { %4907 = shalt.err (!%p4904_p9)
}
  0x20   :  { %s5759_s2 = sld [smem:[#allocation17_spill]]  ;;  %s4980_s27 = smov [#allocation7]  }
  0x21   :  { %s72_s3 = sshll.u32 %s4980_s27, 4  ;;  %s4981_s29 = smov [#allocation8]   ;;  %s73_s3 = int_to_ptr.vmem [resolvable:$true] %s72_s3 }
  0x22   :  { %s102_s4 = sshll.u32 %s4981_s29, 4  ;;  %s4916_s28 = scalar_lea.vmem %s73_s3, 1024  ;;  %s103_s4 = int_to_ptr.vmem [resolvable:$true] %s102_s4 }
  0x23   :  { %p4917_p10 = scmp.ne.s32.totalorder %s73_s3, %s4916_s28  ;;  %p4921_p11 = scmp.lt.s32.totalorder %s73_s3, %s73_s3 }
  0x24   :  { %p4922_p12 = scmp.lt.s32.totalorder %s4916_s28, %s4916_s28 }
  0x26   :  { %46 = dma.hbm_to_vmem [thread:$0]  %s5759_s2, 1024, %s41_s30, [#allocation3], %s4978_s0, %s4978_s0, %s5745_s23  }
  0x27   :  { %p4923_p13 = por %p4922_p12, %p4921_p11 }
  0x29   :  { %p4924_p0 = pnand %p4923_p13, %p4917_p10 }
  0x2b   :  { %4927 = shalt.err (!%p4924_p0)
}
  0x2c   :  { %78 = dma.hbm_to_vmem [thread:$0]  %s5724_s8, 1024, %s73_s3, [#allocation6], %s4978_s0, %s4978_s0, %s5745_s23  }
  0x2d   :  { %s4936_s30 = scalar_lea.vmem %s103_s4, 512  ;;  %p4941_p2 = scmp.lt.s32.totalorder %s103_s4, %s103_s4 }
  0x2e   :  { %p4937_p1 = scmp.ne.s32.totalorder %s103_s4, %s4936_s30  ;;  %p4942_p3 = scmp.lt.s32.totalorder %s4936_s30, %s4936_s30 }
  0x30   :  { %p4943_p4 = por %p4942_p3, %p4941_p2 }
  0x32   :  { %p4944_p5 = pnand %p4943_p4, %p4937_p1 }
  0x34   :  { %4947 = shalt.err (!%p4944_p5)
}
  0x35   :  { %108 = dma.hbm_to_vmem [thread:$0]  %s5734_s18, 512, %s103_s4, [#allocation9], %s4978_s0, %s4978_s0, %s5745_s23  }
  0x36   :  { %4968 = dma.done.wait [#allocation3], 1024  }
  0x37   :  { %4969 = vsyncadd [#allocation3], 4294966272 }
  0x38   :  { %4970 = dma.done.wait [#allocation6], 2048  }
  0x39   :  { %4971 = vsyncadd [#allocation6], 4294965248 }
  0x3a   :  { %4972 = dma.done.wait [#allocation9], 512  }
  0x3b   :  { %4973 = vsyncadd [#allocation9], 4294966784  ;;  %v4982_v0 = vmov 0   ;;  %s5760_s26 = sld [smem:[#allocation15_spill]]  ;;  %v150_v2 = vld [vmem:[#allocation2 + $0x38] sm:$0xff]  ;;  %v149_v3 = vld [vmem:[#allocation2 + $0x30] sm:$0xff]  ;;  %v129_v12 = vlaneseq }
  0x3c   :  { %4773 = vset.pattern.permute.xlu0 %v4982_v0  ;;  %4445 = vmatprep.subr.mxu0 %v150_v2  ;;  %v148_v5 = vld [vmem:[#allocation2 + $0x28] sm:$0xff]  ;;  %v147_v6 = vld [vmem:[#allocation2 + $0x20] sm:$0xff]  ;;  %v146_v7 = vld [vmem:[#allocation2 + $0x18] sm:$0xff]  ;;  %v4983_v11 = vmov 0.0   ;;  %vm153_vm0 = vcmask 523264   ;;  %s5761_s3 = sld [smem:[#allocation18_spill]] }
  0x3d   :  { %4446 = vmatpush3.msra.mxu0 %v150_v2  ;;  %v145_v8 = vld [vmem:[#allocation2 + $0x10] sm:$0xff]  ;;  %v144_v9 = vld [vmem:[#allocation2 + $0x8] sm:$0xff]  ;;  %v143_v10 = vld [vmem:[#allocation2] sm:$0xff]  ;;  %v130_v13 = vand.u32 127, %v129_v12  ;;  %vm237_vm3 = vcmask 261120   ;;  %s5762_s5 = sld [smem:[#allocation19_spill]] }
  0x3e   :  { %4447 = vmatprep.subr.mxu0 %v149_v3  ;;  %v291_v30 = vld [vmem:[#allocation5 + $0x18] sm:$0xff]  ;;  %v290_v31 = vld [vmem:[#allocation5 + $0x10] sm:$0xff]  ;;  %v289_v32 = vld [vmem:[#allocation5 + $0x8] sm:$0xff]  ;;  %s5763_s6 = sld [smem:[#allocation20_spill]]  ;;  %vm4984_vm4 = vmmov 0   ;;  %s4986_s2 = smov 96  }
  0x3f   :  { %4448 = vmatpush3.msra.mxu0 %v149_v3  ;;  %4464 = vmatprep.subr.mxu1 %v291_v30  ;;  %v288_v33 = vld [vmem:[#allocation5] sm:$0xff]  ;;  %s4987_s27 = smov 80   ;;  %s4988_s18 = smov 88   ;;  %vm383_vm5 = vcmask 64512   ;;  %vm1432_vm6 = vcmask 130048   ;;  %vm1434_vm7 = vcmask 195584  }
  0x40   :  { %4449 = vmatprep.subr.mxu0 %v148_v5  ;;  %4465 = vmatpush3.msra.mxu1 %v291_v30  ;;  %v4201_v61 = vld [vmem:[%s5723_s7] ss:$0 sm:$0xff]  ;;  %s4989_s0 = smov 112   ;;  %s4991_s29 = smov 104   ;;  %vm4006_vm8 = vcmask 1040384  }
  0x41   :  { %v127_v1 = vld [vmem:[%s5760_s26] sm:$0xff]  ;;  %v128_v4 = vld [vmem:[%s5760_s26 + $0x8] sm:$0xff]  ;;  %4450 = vmatpush3.msra.mxu0 %v148_v5  ;;  %4466 = vmatprep.subr.mxu1 %v290_v31  ;;  %s4985_s26 = smov 72   ;;  %s5764_s1 = sld [smem:[#allocation16_spill]] }
  0x42   :  { %132 = vperm.xlu0 %4773, %v127_v1   ;;  %4451 = vmatprep.subr.mxu0 %v147_v6  ;;  %v152_v18 = vld [vmem:[%s5761_s3 + $0x8] sm:$0xff]  ;;  %v151_v20 = vld [vmem:[%s5761_s3] sm:$0xff]  ;;  %s4990_s3 = smov 120   ;;  %s4993_s30 = smov 48  }
  0x43   :  { %4452 = vmatpush3.msra.mxu0 %v147_v6  ;;  %4467 = vmatpush3.msra.mxu1 %v290_v31  ;;  %v4199_v50 = vld [vmem:[%s5762_s5] ss:$0 sm:$0xff]  ;;  %s4992_s5 = smov 64   ;;  %s5749_s24 = smov 40  }
  0x44   :  { %4453 = vmatprep.subr.mxu0 %v146_v7  ;;  %4468 = vmatprep.subr.mxu1 %v289_v32  ;;  %v4200_v54 = vld [vmem:[%s5763_s6] ss:$0 sm:$0xff]  ;;  %s5747_s6 = smov 56   ;;  %s5743_s8 = smov 16  }
  0x45   :  { %4454 = vmatpush3.msra.mxu0 %v146_v7  ;;  %4469 = vmatpush3.msra.mxu1 %v289_v32  ;;  %s5741_s25 = smov 24  }
  0x46   :  { %135 = vperm.xlu0 %4773, %v128_v4   ;;  %4455 = vmatprep.subr.mxu0 %v145_v8 }
  0x47   :  { %4456 = vmatpush3.msra.mxu0 %v145_v8  ;;  %4470 = vmatprep.subr.mxu1 %v288_v33 }
  0x48   :  { %4457 = vmatprep.subr.mxu0 %v144_v9  ;;  %4471 = vmatpush3.msra.mxu1 %v288_v33 }
  0x49   :  { %4458 = vmatpush3.msra.mxu0 %v144_v9  ;;  %4475 = vmatprep.subr.mxu1 %v4983_v11 }
  0x4a   :  { %4459 = vmatprep.subr.mxu0 %v143_v10 }
  0x4b   :  { %4460 = vmatpush3.msra.mxu0 %v143_v10 }
  0x4c   :  { %4485 = vmatprep.subr.mxu0 %v4983_v11 }
  0xbd   :  { %v133_v14 = vpop.permute.xlu0 %132 }
  0xbe   :  { %vm137_vm1 = vcmp.eq.s32.totalorder %v133_v14, %v130_v13 }
  0xbf   :  { %v4195_v15 = vsel %vm137_vm1, 1.0, %v4983_v11 }
  0xc0   :  { %4461 = vmatprep.mubr.msk.f32.mxu0 %vm153_vm0, %v4195_v15 }
  0xc1   :  { %v136_v16 = vpop.permute.xlu0 %135 }
  0xc2   :  { %vm138_vm2 = vcmp.eq.s32.totalorder %v136_v16, %v130_v13 }
  0xc3   :  { %v4196_v17 = vsel %vm138_vm2, 1.0, %v4983_v11 }
  0xc4   :  { %4462 = vmatmul.mubr.msk.f32.vlgmr.msra.gmra.mxu0 %vm153_vm0, %v4196_v17  ;;  %v285_v17 = vld [vmem:[%s5764_s1] sm:$0x3] }
  0xc5   :  { %4487 = vmatprep.mubr.msk.f32.mxu0 %vm4984_vm4, %v4983_v11 }
 0x184   :  { %v4463_v19 = vpop.f32.mrf.mxu0 }
 0x185   :  { %v232_v21 = vadd.f32 %v4463_v19, %v152_v18  ;;  %v286_v18 = vsub.f32 1.0, %v285_v17  ;;  %v460_v19 = vshrl.u32 %v129_v12, 7 }
 0x186   :  { %v226_v22 = vpop.f32.mrf.mxu0 }
 0x187   :  { %v227_v23 = vadd.f32 %v226_v22, %v151_v20  ;;  %v241_v24 = vsel %vm237_vm3, %v232_v21, 0.0  ;;  %v248_v28 = vmul.f32 %v232_v21, %v232_v21  ;;  %v287_v20 = vmul.f32 -10000.0, %v286_v18 }
 0x188   :  { %242 = vadd.xlane.f32.xlu1 %v241_v24  ;;  %v784_v12 = vsub.s32 1, %v460_v19 }
 0x189   :  { %v247_v25 = vmul.f32 %v227_v23, %v227_v23  ;;  %v238_v27 = vsel %vm237_vm3, %v227_v23, 0.0  ;;  %v252_v29 = vsel %vm237_vm3, %v248_v28, 0.0 }
 0x18b   :  { %v249_v26 = vsel %vm237_vm3, %v247_v25, 0.0 }
 0x18c   :  { %250 = vadd.xlane.f32.xlu0 %v249_v26  ;;  %239 = vadd.xlane.f32.xlu1 %v238_v27 }
 0x190   :  { %253 = vadd.xlane.f32.xlu1 %v252_v29 }
 0x211   :  { %v243_v34 = vpop.xlane.xlu1 %242 }
 0x212   :  { %v246_v37 = vmul.f32 0.03125, %v243_v34 }
 0x214   :  { %v258_v42 = vmul.f32 %v246_v37, %v246_v37  ;;  %v262_v51 = vsub.f32 %v232_v21, %v246_v37  ;;  %v461_v21 = vsub.s32 0, %v460_v19 }
 0x215   :  { %v251_v35 = vpop.xlane.xlu0 %250  ;;  %v240_v36 = vpop.xlane.xlu1 %239 }
 0x216   :  { %v245_v38 = vmul.f32 0.03125, %v240_v36  ;;  %v255_v39 = vmul.f32 0.03125, %v251_v35  ;;  %v5260_v22 = vrot.slane %v287_v20, %v461_v21  ;;  %v5266_v36 = vrot.slane %v287_v20, %v784_v12 }
 0x218   :  { %v257_v40 = vmul.f32 %v245_v38, %v245_v38  ;;  %v261_v48 = vsub.f32 %v227_v23, %v245_v38 }
 0x219   :  { %v254_v41 = vpop.xlane.xlu1 %253 }
 0x21a   :  { %v259_v43 = vsub.f32 %v255_v39, %v257_v40  ;;  %v256_v44 = vmul.f32 0.03125, %v254_v41 }
 0x21c   :  { %v263_v45 = vadd.f32 1e-12, %v259_v43  ;;  %v260_v46 = vsub.f32 %v256_v44, %v258_v42 }
 0x21e   :  { %4774 = vrsqrt.f32 %v263_v45  ;;  %v264_v47 = vadd.f32 1e-12, %v260_v46 }
 0x220   :  { %4776 = vrsqrt.f32 %v264_v47 }
 0x22b   :  { %v4775_v49 = vpop.eup %4774 }
 0x22c   :  { %v267_v52 = vmul.f32 %v4775_v49, %v261_v48 }
 0x22d   :  { %v4777_v53 = vpop.eup %4776 }
 0x22e   :  { %v268_v55 = vmul.f32 %v4777_v53, %v262_v51  ;;  %v275_v56 = vmul.f32 %v4199_v50, %v267_v52 }
 0x230   :  { %v276_v57 = vmul.f32 %v4199_v50, %v268_v55  ;;  %v5167_v58 = vadd.f32 %v4200_v54, %v275_v56 }
 0x232   :  { %v5169_v59 = vadd.f32 %v4200_v54, %v276_v57  ;;  %4472 = vmatprep.mubr.msk.f32.mxu1 %vm237_vm3, %v5167_v58 }
 0x234   :  { %4473 = vmatmul.mubr.msk.f32.vlgmr.msra.gmra.mxu1 %vm237_vm3, %v5169_v59 }
 0x235   :  { %4477 = vmatprep.mubr.msk.f32.mxu1 %vm4984_vm4, %v4983_v11 }
 0x2f4   :  { %v4474_v60 = vpop.f32.mrf.mxu1 }
 0x2f5   :  { %v5188_v0 = vadd.f32 %v4474_v60, %v4201_v61 }
 0x2f6   :  { %v371_v62 = vpop.f32.mrf.mxu1 }
 0x2f7   :  { %v5182_v63 = vadd.f32 %v4201_v61, %v371_v62 }
 0x2f9   :  { %626 = vrot.lane.b32.xlu0 %v5182_v63, %s4985_s26  ;;  %381 = vrot.lane.b32.xlu1 %v5182_v63, %s4986_s2 }
 0x2fd   :  { %869 = vrot.lane.b32.xlu0 %v5188_v0, %s4987_s27  ;;  %466 = vrot.lane.b32.xlu1 %v5182_v63, %s4988_s18 }
 0x301   :  { %867 = vrot.lane.b32.xlu0 %v5188_v0, %s4989_s0  ;;  %464 = vrot.lane.b32.xlu1 %v5182_v63, %s4990_s3 }
 0x305   :  { %546 = vrot.lane.b32.xlu1 %v5182_v63, %s4987_s27 }
 0x309   :  { %705 = vrot.lane.b32.xlu1 %v5188_v0, %s4986_s2 }
 0x30d   :  { %789 = vrot.lane.b32.xlu1 %v5188_v0, %s4988_s18 }
 0x311   :  { %787 = vrot.lane.b32.xlu1 %v5188_v0, %s4990_s3 }
 0x315   :  { %544 = vrot.lane.b32.xlu1 %v5182_v63, %s4989_s0 }
 0x319   :  { %624 = vrot.lane.b32.xlu1 %v5182_v63, %s4991_s29 }
 0x31d   :  { %949 = vrot.lane.b32.xlu1 %v5188_v0, %s4985_s26 }
 0x321   :  { %947 = vrot.lane.b32.xlu1 %v5188_v0, %s4991_s29 }
 0x36b   :  { %v382_v1 = vpop.permute.xlu1 %381  ;;  %v627_v4 = vpop.permute.xlu0 %626 }
 0x36c   :  { %4476 = vmatpush3.xpose.msk.msra.mxu1 %vm383_vm5, %v382_v1 }
 0x36d   :  { %4480 = vmatprep.subr.mxu1 %v4983_v11 }
 0x36f   :  { %4478 = vmatmul.mubr.msk.f32.vlgmr.msra.gmra.mxu1 %vm383_vm5, %v5182_v63  ;;  %v467_v2 = vpop.permute.xlu1 %466  ;;  %v870_v10 = vpop.permute.xlu0 %869 }
 0x370   :  { %4481 = vmatpush3.xpose.msk.msra.mxu1 %vm383_vm5, %v467_v2  ;;  %4482 = vmatprep.mubr.msk.f32.mxu1 %vm4984_vm4, %v4983_v11 }
 0x371   :  { %4490 = vmatprep.subr.mxu1 %v4983_v11 }
 0x373   :  { %v465_v3 = vpop.permute.xlu1 %464  ;;  %v868_v14 = vpop.permute.xlu0 %867 }
 0x374   :  { %4483 = vmatmul.mubr.msk.f32.vlgmr.msra.gmra.mxu1 %vm383_vm5, %v465_v3 }
 0x375   :  { %4491 = vmatpush3.xpose.msk.msra.mxu1 %vm383_vm5, %v627_v4  ;;  %4492 = vmatprep.mubr.msk.f32.mxu1 %vm4984_vm4, %v4983_v11 }
 0x376   :  { %4500 = vmatprep.subr.mxu1 %v4983_v11 }
 0x377   :  { %v547_v5 = vpop.permute.xlu1 %546 }
 0x378   :  { %4486 = vmatpush3.xpose.msk.msra.mxu0 %vm383_vm5, %v547_v5 }
 0x379   :  { %4495 = vmatprep.subr.mxu0 %v4983_v11 }
 0x37b   :  { %v706_v6 = vpop.permute.xlu1 %705 }
 0x37f   :  { %v790_v7 = vpop.permute.xlu1 %789 }
 0x383   :  { %v788_v8 = vpop.permute.xlu1 %787 }
 0x387   :  { %v545_v9 = vpop.permute.xlu1 %544 }
 0x388   :  { %4488 = vmatmul.mubr.msk.f32.vlgmr.msra.gmra.mxu0 %vm383_vm5, %v545_v9 }
 0x389   :  { %4496 = vmatpush3.xpose.msk.msra.mxu0 %vm383_vm5, %v706_v6  ;;  %4497 = vmatprep.mubr.msk.f32.mxu0 %vm4984_vm4, %v4983_v11 }
 0x38a   :  { %4505 = vmatprep.subr.mxu0 %v4983_v11 }
 0x38b   :  { %v625_v13 = vpop.permute.xlu1 %624 }
 0x38c   :  { %4493 = vmatmul.mubr.msk.f32.vlgmr.msra.gmra.mxu1 %vm383_vm5, %v625_v13  ;;  %4498 = vmatmul.mubr.msk.f32.vlgmr.msra.gmra.mxu0 %vm383_vm5, %v5188_v0 }
 0x38d   :  { %4501 = vmatpush3.xpose.msk.msra.mxu1 %vm383_vm5, %v790_v7  ;;  %4506 = vmatpush3.xpose.msk.msra.mxu0 %vm383_vm5, %v870_v10 }
 0x38e   :  { %4502 = vmatprep.mubr.msk.f32.mxu1 %vm4984_vm4, %v4983_v11  ;;  %4507 = vmatprep.mubr.msk.f32.mxu0 %vm4984_vm4, %v4983_v11 }
 0x38f   :  { %4510 = vmatprep.subr.mxu1 %v4983_v11  ;;  %v950_v15 = vpop.permute.xlu1 %949  ;;  %4515 = vmatprep.subr.mxu0 %v4983_v11 }
 0x390   :  { %4503 = vmatmul.mubr.msk.f32.vlgmr.msra.gmra.mxu1 %vm383_vm5, %v788_v8  ;;  %4508 = vmatmul.mubr.msk.f32.vlgmr.msra.gmra.mxu0 %vm383_vm5, %v868_v14 }
 0x391   :  { %4511 = vmatpush3.xpose.msk.msra.mxu1 %vm383_vm5, %v950_v15  ;;  %4512 = vmatprep.mubr.msk.f32.mxu1 %vm4984_vm4, %v4983_v11 }
 0x392   :  { %4520 = vmatprep.subr.mxu1 %v4983_v11  ;;  %4517 = vmatprep.mubr.msk.f32.mxu0 %vm4984_vm4, %v4983_v11 }
 0x393   :  { %v948_v16 = vpop.permute.xlu1 %947 }
 0x394   :  { %4513 = vmatmul.mubr.msk.f32.vlgmr.msra.gmra.mxu1 %vm383_vm5, %v948_v16 }
 0x395   :  { %4522 = vmatprep.mubr.msk.f32.mxu1 %vm4984_vm4, %v4983_v11 }
 0x42f   :  { %v454_v23 = vpop.f32.mrf.mxu1 }
 0x430   :  { %v458_v24 = vmul.f32 0.35355338, %v454_v23 }
 0x431   :  { %v4479_v25 = vpop.f32.mrf.mxu1 }
 0x432   :  { %v463_v26 = vadd.f32 %v5260_v22, %v458_v24 }
 0x434   :  { %v538_v27 = vpop.f32.mrf.mxu1  ;;  %v1027_v28 = vsel %vm383_vm5, %v463_v26, -inf }
 0x435   :  { %v542_v29 = vmul.f32 0.35355338, %v538_v27  ;;  %1028 = vmax.xlane.f32.xlu0 %v1027_v28 }
 0x436   :  { %v4484_v30 = vpop.f32.mrf.mxu1 }
 0x437   :  { %v543_v31 = vadd.f32 %v542_v29, %v5260_v22 }
 0x439   :  { %v1030_v32 = vsel %vm383_vm5, %v543_v31, -inf }
 0x43a   :  { %1031 = vmax.xlane.f32.xlu1 %v1030_v32 }
 0x448   :  { %v618_v33 = vpop.f32.mrf.mxu0 }
 0x449   :  { %v622_v34 = vmul.f32 0.35355338, %v618_v33 }
 0x44a   :  { %v4489_v35 = vpop.f32.mrf.mxu0 }
 0x44b   :  { %v623_v37 = vadd.f32 %v622_v34, %v5260_v22 }
 0x44c   :  { %v698_v38 = vpop.f32.mrf.mxu1  ;;  %v777_v39 = vpop.f32.mrf.mxu0 }
 0x44d   :  { %v702_v40 = vmul.f32 0.35355338, %v698_v38  ;;  %v781_v41 = vmul.f32 0.35355338, %v777_v39  ;;  %v1033_v42 = vsel %vm383_vm5, %v623_v37, -inf }
 0x44e   :  { %1034 = vmax.xlane.f32.xlu0 %v1033_v42  ;;  %v4494_v43 = vpop.f32.mrf.mxu1  ;;  %v4499_v44 = vpop.f32.mrf.mxu0 }
 0x44f   :  { %v786_v45 = vadd.f32 %v5266_v36, %v781_v41  ;;  %v703_v46 = vadd.f32 %v702_v40, %v5260_v22 }
 0x450   :  { %v861_v47 = vpop.f32.mrf.mxu1  ;;  %v941_v48 = vpop.f32.mrf.mxu0 }
 0x451   :  { %v865_v49 = vmul.f32 0.35355338, %v861_v47  ;;  %v945_v50 = vmul.f32 0.35355338, %v941_v48  ;;  %v1039_v51 = vsel %vm383_vm5, %v786_v45, -inf  ;;  %v1036_v52 = vsel %vm383_vm5, %v703_v46, -inf }
 0x452   :  { %1040 = vmax.xlane.f32.xlu1 %v1039_v51  ;;  %v4509_v53 = vpop.f32.mrf.mxu0  ;;  %1037 = vmax.xlane.f32.xlu0 %v1036_v52  ;;  %v4504_v54 = vpop.f32.mrf.mxu1 }
 0x453   :  { %v946_v55 = vadd.f32 %v945_v50, %v5266_v36  ;;  %v866_v56 = vadd.f32 %v865_v49, %v5266_v36 }
 0x454   :  { %v1021_v57 = vpop.f32.mrf.mxu1 }
 0x455   :  { %v1025_v60 = vmul.f32 0.35355338, %v1021_v57  ;;  %v1045_v61 = vsel %vm383_vm5, %v946_v55, -inf  ;;  %v1042_v62 = vsel %vm383_vm5, %v866_v56, -inf }
 0x456   :  { %1046 = vmax.xlane.f32.xlu1 %v1045_v61  ;;  %1043 = vmax.xlane.f32.xlu0 %v1042_v62  ;;  %v4514_v1 = vpop.f32.mrf.mxu1 }
 0x457   :  { %v1026_v2 = vadd.f32 %v1025_v60, %v5266_v36 }
 0x459   :  { %v1048_v3 = vsel %vm383_vm5, %v1026_v2, -inf }
 0x45a   :  { %1049 = vmax.xlane.f32.xlu0 %v1048_v3 }
 0x467   :  { %1115 = vrot.lane.b32.xlu1 %v5182_v63, %s4992_s5 }
 0x46b   :  { %1267 = vrot.lane.b32.xlu1 %v5182_v63, %s4993_s30 }
 0x46f   :  { %1343 = vrot.lane.b32.xlu1 %v5182_v63, %s5749_s24 }
 0x470   :  { %1191 = vrot.lane.b32.xlu0 %v5182_v63, %s5747_s6 }
 0x473   :  { %1512 = vrot.lane.b32.xlu1 %v5188_v0, %s5747_s6 }
 0x474   :  { %1436 = vrot.lane.b32.xlu0 %v5188_v0, %s4992_s5 }
 0x4be   :  { %v1029_v4 = vpop.xlane.xlu0 %1028 }
 0x4bf   :  { %v1051_v5 = vsub.f32 %v463_v26, %v1029_v4 }
 0x4c1   :  { %v1059_v6 = vmul.f32 1.442695, %v1051_v5 }
 0x4c3   :  { %4778 = vpow2.f32 %v1059_v6  ;;  %v1032_v7 = vpop.xlane.xlu1 %1031 }
 0x4c4   :  { %v1052_v8 = vsub.f32 %v543_v31, %v1032_v7 }
 0x4c6   :  { %v1061_v9 = vmul.f32 1.442695, %v1052_v8 }
 0x4c8   :  { %4780 = vpow2.f32 %v1061_v9 }
 0x4d0   :  { %v5292_v10 = vpop.eup %4778 }
 0x4d1   :  { %v1075_v13 = vsel %vm383_vm5, %v5292_v10, 0.0 }
 0x4d2   :  { %1076 = vadd.xlane.f32.xlu1 %v1075_v13 }
 0x4d5   :  { %v5296_v63 = vpop.eup %4780 }
 0x4d6   :  { %v1078_v14 = vsel %vm383_vm5, %v5296_v63, 0.0 }
 0x4d7   :  { %v1035_v15 = vpop.xlane.xlu0 %1034  ;;  %1079 = vadd.xlane.f32.xlu0 %v1078_v14 }
 0x4d8   :  { %v1053_v16 = vsub.f32 %v623_v37, %v1035_v15 }
 0x4da   :  { %v1063_v17 = vmul.f32 1.442695, %v1053_v16 }
 0x4db   :  { %v1038_v18 = vpop.xlane.xlu0 %1037  ;;  %v1041_v19 = vpop.xlane.xlu1 %1040 }
 0x4dc   :  { %4782 = vpow2.f32 %v1063_v17  ;;  %v1054_v20 = vsub.f32 %v703_v46, %v1038_v18  ;;  %v1055_v21 = vsub.f32 %v786_v45, %v1041_v19 }
 0x4de   :  { %v1065_v23 = vmul.f32 1.442695, %v1054_v20  ;;  %v1067_v24 = vmul.f32 1.442695, %v1055_v21 }
 0x4df   :  { %v1044_v25 = vpop.xlane.xlu0 %1043  ;;  %v1047_v26 = vpop.xlane.xlu1 %1046 }
 0x4e0   :  { %4784 = vpow2.f32 %v1065_v23  ;;  %v1056_v27 = vsub.f32 %v866_v56, %v1044_v25  ;;  %v1057_v28 = vsub.f32 %v946_v55, %v1047_v26  ;;  %v1758_v23 = vld [vmem:[#allocation7 + $0x18] sm:$0xff]  ;;  %v1756_v25 = vld [vmem:[#allocation7 + $0x8] sm:$0xff] }
 0x4e1   :  { %4786 = vpow2.f32 %v1067_v24  ;;  %v1757_v24 = vld [vmem:[#allocation7 + $0x10] sm:$0xff] }
 0x4e2   :  { %v1069_v29 = vmul.f32 1.442695, %v1056_v27  ;;  %v1071_v30 = vmul.f32 1.442695, %v1057_v28  ;;  %v1755_v27 = vld [vmem:[#allocation7] sm:$0xff] }
 0x4e3   :  { %v1050_v31 = vpop.xlane.xlu0 %1049  ;;  %v1116_v32 = vpop.permute.xlu1 %1115 }
 0x4e4   :  { %4788 = vpow2.f32 %v1069_v29  ;;  %v1058_v12 = vsub.f32 %v1026_v2, %v1050_v31  ;;  %4516 = vmatpush3.msra.mxu0 %v1116_v32 }
 0x4e5   :  { %4790 = vpow2.f32 %v1071_v30  ;;  %4525 = vmatprep.subr.mxu0 %v4983_v11 }
 0x4e6   :  { %v1073_v33 = vmul.f32 1.442695, %v1058_v12 }
 0x4e7   :  { %v1192_v34 = vpop.permute.xlu0 %1191  ;;  %v1268_v48 = vpop.permute.xlu1 %1267 }
 0x4e8   :  { %4792 = vpow2.f32 %v1073_v33  ;;  %4521 = vmatpush3.msra.mxu1 %v1192_v34 }
 0x4e9   :  { %v4783_v35 = vpop.eup %4782  ;;  %4530 = vmatprep.subr.mxu1 %v4983_v11 }
 0x4ea   :  { %v1081_v37 = vsel %vm383_vm5, %v4783_v35, 0.0 }
 0x4eb   :  { %1082 = vadd.xlane.f32.xlu1 %v1081_v37  ;;  %v1344_v49 = vpop.permute.xlu1 %1343  ;;  %v1437_v52 = vpop.permute.xlu0 %1436 }
 0x4ed   :  { %v4785_v38 = vpop.eup %4784 }
 0x4ee   :  { %v4787_v39 = vpop.eup %4786  ;;  %v1084_v40 = vsel %vm383_vm5, %v4785_v38, 0.0 }
 0x4ef   :  { %1085 = vadd.xlane.f32.xlu0 %v1084_v40  ;;  %v1087_v41 = vsel %vm383_vm5, %v4787_v39, 0.0  ;;  %v1513_v50 = vpop.permute.xlu1 %1512 }
 0x4f0   :  { %1088 = vadd.xlane.f32.xlu1 %v1087_v41 }
 0x4f1   :  { %v4789_v42 = vpop.eup %4788 }
 0x4f2   :  { %v5305_v43 = vpop.eup %4790  ;;  %v1090_v44 = vsel %vm383_vm5, %v4789_v42, 0.0 }
 0x4f3   :  { %1091 = vadd.xlane.f32.xlu0 %v1090_v44  ;;  %v1093_v45 = vsel %vm383_vm5, %v5305_v43, 0.0 }
 0x4f4   :  { %1094 = vadd.xlane.f32.xlu1 %v1093_v45 }
 0x4f5   :  { %v5310_v46 = vpop.eup %4792 }
 0x4f6   :  { %v1096_v47 = vsel %vm383_vm5, %v5310_v46, 0.0 }
 0x4f7   :  { %1097 = vadd.xlane.f32.xlu0 %v1096_v47 }
 0x505   :  { %1664 = vrot.lane.b32.xlu1 %v5188_v0, %s5749_s24 }
 0x50d   :  { %1588 = vrot.lane.b32.xlu0 %v5188_v0, %s4993_s30 }
 0x55b   :  { %v1077_v51 = vpop.xlane.xlu1 %1076 }
 0x55c   :  { %4794 = vrcp.f32 %v1077_v51  ;;  %v4228_v51 = vld [vmem:[%s5725_s9] ss:$0 sm:$0xff] }
 0x560   :  { %v1080_v53 = vpop.xlane.xlu0 %1079 }
 0x561   :  { %4796 = vrcp.f32 %v1080_v53 }
 0x569   :  { %v4795_v54 = vpop.eup %4794 }
 0x56a   :  { %v1107_v55 = vmul.f32 %v4795_v54, %v5292_v10 }
 0x56c   :  { %4518 = vmatmul.mubr.msk.f32.vlgmr.msra.gmra.mxu0 %vm383_vm5, %v1107_v55 }
 0x56d   :  { %4526 = vmatpush3.msra.mxu0 %v1268_v48  ;;  %4527 = vmatprep.mubr.msk.f32.mxu0 %vm4984_vm4, %v4983_v11 }
 0x56e   :  { %v4797_v56 = vpop.eup %4796  ;;  %4535 = vmatprep.subr.mxu0 %v4983_v11 }
 0x56f   :  { %v1108_v0 = vmul.f32 %v4797_v56, %v5296_v63 }
 0x571   :  { %4523 = vmatmul.mubr.msk.f32.vlgmr.msra.gmra.mxu1 %vm383_vm5, %v1108_v0 }
 0x572   :  { %4531 = vmatpush3.msra.mxu1 %v1344_v49  ;;  %4532 = vmatprep.mubr.msk.f32.mxu1 %vm4984_vm4, %v4983_v11 }
 0x573   :  { %4540 = vmatprep.subr.mxu1 %v4983_v11 }
 0x574   :  { %v1083_v57 = vpop.xlane.xlu1 %1082 }
 0x575   :  { %4798 = vrcp.f32 %v1083_v57 }
 0x578   :  { %v1086_v60 = vpop.xlane.xlu0 %1085 }
 0x579   :  { %4800 = vrcp.f32 %v1086_v60  ;;  %v1089_v61 = vpop.xlane.xlu1 %1088 }
 0x57a   :  { %4802 = vrcp.f32 %v1089_v61 }
 0x57c   :  { %v1092_v62 = vpop.xlane.xlu0 %1091 }
 0x57d   :  { %4804 = vrcp.f32 %v1092_v62  ;;  %v1095_v1 = vpop.xlane.xlu1 %1094 }
 0x57e   :  { %4806 = vrcp.f32 %v1095_v1 }
 0x580   :  { %v1098_v2 = vpop.xlane.xlu0 %1097 }
 0x581   :  { %4808 = vrcp.f32 %v1098_v2  ;;  %v1665_v15 = vpop.permute.xlu1 %1664 }
 0x582   :  { %v4799_v3 = vpop.eup %4798 }
 0x583   :  { %v1109_v4 = vmul.f32 %v4799_v3, %v4783_v35  ;;  %v1898_v3 = vld [vmem:[%s5728_s12 + $0x8] sm:$0xff] }
 0x584   :  { %v1589_v10 = vpop.permute.xlu0 %1588 }
 0x585   :  { %4528 = vmatmul.mubr.msk.f32.vlgmr.msra.gmra.mxu0 %vm383_vm5, %v1109_v4  ;;  %v1897_v4 = vld [vmem:[%s5728_s12] sm:$0xff] }
 0x586   :  { %v4801_v5 = vpop.eup %4800  ;;  %4536 = vmatpush3.msra.mxu0 %v1437_v52  ;;  %4537 = vmatprep.mubr.msk.f32.mxu0 %vm4984_vm4, %v4983_v11 }
 0x587   :  { %v4803_v6 = vpop.eup %4802  ;;  %4545 = vmatprep.subr.mxu0 %v4983_v11  ;;  %v1110_v7 = vmul.f32 %v4801_v5, %v4785_v38 }
 0x588   :  { %v1111_v8 = vmul.f32 %v4803_v6, %v4787_v39 }
 0x589   :  { %4533 = vmatmul.mubr.msk.f32.vlgmr.msra.gmra.mxu1 %vm383_vm5, %v1110_v7 }
 0x58a   :  { %v4805_v9 = vpop.eup %4804  ;;  %4538 = vmatmul.mubr.msk.f32.vlgmr.msra.gmra.mxu0 %vm383_vm5, %v1111_v8  ;;  %4541 = vmatpush3.msra.mxu1 %v1513_v50 }
 0x58b   :  { %v4807_v13 = vpop.eup %4806  ;;  %4546 = vmatpush3.msra.mxu0 %v1589_v10  ;;  %4542 = vmatprep.mubr.msk.f32.mxu1 %vm4984_vm4, %v4983_v11  ;;  %v1112_v63 = vmul.f32 %v4805_v9, %v4789_v42 }
 0x58c   :  { %4547 = vmatprep.mubr.msk.f32.mxu0 %vm4984_vm4, %v4983_v11  ;;  %4550 = vmatprep.subr.mxu1 %v4983_v11  ;;  %v1113_v14 = vmul.f32 %v4807_v13, %v5305_v43 }
 0x58d   :  { %4543 = vmatmul.mubr.msk.f32.vlgmr.msra.gmra.mxu1 %vm383_vm5, %v1112_v63  ;;  %4555 = vmatprep.subr.mxu0 %v1758_v23 }
 0x58e   :  { %v4809_v16 = vpop.eup %4808  ;;  %4548 = vmatmul.mubr.msk.f32.vlgmr.msra.gmra.mxu0 %vm383_vm5, %v1113_v14  ;;  %4551 = vmatpush3.msra.mxu1 %v1665_v15 }
 0x58f   :  { %4552 = vmatprep.mubr.msk.f32.mxu1 %vm4984_vm4, %v4983_v11  ;;  %v1114_v17 = vmul.f32 %v4809_v16, %v5310_v46  ;;  %4556 = vmatpush3.msra.mxu0 %v1758_v23  ;;  %v4231_v23 = vld [vmem:[%s5726_s10] ss:$0 sm:$0xff] }
 0x590   :  { %4557 = vmatprep.subr.mxu0 %v1757_v24 }
 0x591   :  { %4553 = vmatmul.mubr.msk.f32.vlgmr.msra.gmra.mxu1 %vm383_vm5, %v1114_v17  ;;  %4558 = vmatpush3.msra.mxu0 %v1757_v24 }
 0x592   :  { %4559 = vmatprep.subr.mxu0 %v1756_v25 }
 0x593   :  { %4560 = vmatpush3.msra.mxu0 %v1756_v25  ;;  %v4232_v25 = vld [vmem:[%s5727_s11] ss:$0 sm:$0xff] }
 0x594   :  { %4561 = vmatprep.subr.mxu0 %v1755_v27 }
 0x595   :  { %4562 = vmatpush3.msra.mxu0 %v1755_v27 }
 0x62c   :  { %v1187_v18 = vpop.f32.mrf.mxu0 }
 0x62e   :  { %v4519_v19 = vpop.f32.mrf.mxu0 }
 0x631   :  { %v1263_v20 = vpop.f32.mrf.mxu1 }
 0x632   :  { %1420 = vrot.lane.b32.xlu0 %v1263_v20, %s5745_s23 }
 0x633   :  { %v4524_v21 = vpop.f32.mrf.mxu1 }
 0x645   :  { %v1339_v26 = vpop.f32.mrf.mxu0 }
 0x646   :  { %1424 = vrot.lane.b32.xlu1 %v1339_v26, %s5743_s8 }
 0x647   :  { %v4529_v28 = vpop.f32.mrf.mxu0 }
 0x649   :  { %v1415_v29 = vpop.f32.mrf.mxu1 }
 0x64a   :  { %v1508_v30 = vpop.f32.mrf.mxu0  ;;  %1428 = vrot.lane.b32.xlu1 %v1415_v29, %s5741_s25 }
 0x64b   :  { %v4534_v31 = vpop.f32.mrf.mxu1 }
 0x64c   :  { %v4539_v32 = vpop.f32.mrf.mxu0 }
 0x64d   :  { %v1584_v12 = vpop.f32.mrf.mxu1 }
 0x64e   :  { %v1660_v33 = vpop.f32.mrf.mxu0  ;;  %1741 = vrot.lane.b32.xlu0 %v1584_v12, %s5745_s23  ;;  %v2006_v12 = vld [vmem:[%s5730_s14 + $0x38] sm:$0xff] }
 0x64f   :  { %v4544_v34 = vpop.f32.mrf.mxu1  ;;  %4577 = vmatprep.subr.mxu0 %v2006_v12 }
 0x650   :  { %v4549_v35 = vpop.f32.mrf.mxu0  ;;  %v2004_v34 = vld [vmem:[%s5730_s14 + $0x28] sm:$0xff] }
 0x651   :  { %v1736_v37 = vpop.f32.mrf.mxu1  ;;  %v2003_v35 = vld [vmem:[%s5730_s14 + $0x20] sm:$0xff] }
 0x652   :  { %1745 = vrot.lane.b32.xlu0 %v1660_v33, %s5743_s8  ;;  %1749 = vrot.lane.b32.xlu1 %v1736_v37, %s5741_s25  ;;  %v2005_v33 = vld [vmem:[%s5730_s14 + $0x30] sm:$0xff]  ;;  %v2002_v37 = vld [vmem:[%s5730_s14 + $0x18] sm:$0xff] }
 0x653   :  { %v4554_v38 = vpop.f32.mrf.mxu1 }
 0x654   :  { %v2001_v38 = vld [vmem:[%s5730_s14 + $0x10] sm:$0xff] }
 0x6a4   :  { %v1421_v39 = vpop.permute.xlu0 %1420 }
 0x6a5   :  { %v1431_v41 = vsel %vm383_vm5, %v1187_v18, %v1421_v39  ;;  %v2000_v39 = vld [vmem:[%s5730_s14 + $0x8] sm:$0xff] }
 0x6b8   :  { %v1425_v40 = vpop.permute.xlu1 %1424 }
 0x6b9   :  { %v1433_v42 = vsel %vm1432_vm6, %v1431_v41, %v1425_v40  ;;  %v1999_v40 = vld [vmem:[%s5730_s14] sm:$0xff] }
 0x6ba   :  { %v4233_v41 = vld [vmem:[%s5729_s13] ss:$0 sm:$0xff] }
 0x6bc   :  { %v1429_v43 = vpop.permute.xlu1 %1428 }
 0x6bd   :  { %v1435_v44 = vsel %vm1434_vm7, %v1433_v42, %v1429_v43 }
 0x6be   :  { %4563 = vmatprep.mubr.msk.f32.mxu0 %vm237_vm3, %v1435_v44 }
 0x6c0   :  { %v1742_v45 = vpop.permute.xlu0 %1741 }
 0x6c1   :  { %v1752_v46 = vsel %vm383_vm5, %v1508_v30, %v1742_v45 }
 0x6c4   :  { %v1746_v47 = vpop.permute.xlu0 %1745  ;;  %v1750_v48 = vpop.permute.xlu1 %1749 }
 0x6c5   :  { %v1753_v49 = vsel %vm1432_vm6, %v1752_v46, %v1746_v47 }
 0x6c6   :  { %v1754_v50 = vsel %vm1434_vm7, %v1753_v49, %v1750_v48 }
 0x6c7   :  { %4564 = vmatmul.mubr.msk.f32.vlgmr.msra.gmra.mxu0 %vm237_vm3, %v1754_v50 }
 0x6c8   :  { %4578 = vmatpush3.msra.mxu0 %v2006_v12 }
 0x6c9   :  { %4579 = vmatprep.subr.mxu0 %v2005_v33 }
 0x6ca   :  { %4580 = vmatpush3.msra.mxu0 %v2005_v33  ;;  %v4240_v33 = vld [vmem:[%s5733_s17] ss:$0 sm:$0xff] }
 0x6cb   :  { %4581 = vmatprep.subr.mxu0 %v2004_v34 }
 0x6cc   :  { %4582 = vmatpush3.msra.mxu0 %v2004_v34 }
 0x6cd   :  { %4583 = vmatprep.subr.mxu0 %v2003_v35 }
 0x6ce   :  { %4584 = vmatpush3.msra.mxu0 %v2003_v35 }
 0x6cf   :  { %4585 = vmatprep.subr.mxu0 %v2002_v37 }
 0x6d0   :  { %4586 = vmatpush3.msra.mxu0 %v2002_v37 }
 0x6d1   :  { %4587 = vmatprep.subr.mxu0 %v2001_v38 }
 0x6d2   :  { %4588 = vmatpush3.msra.mxu0 %v2001_v38  ;;  %v4242_v38 = vld [vmem:[%s5723_s7 + $0x1] ss:$0 sm:$0xff]  ;;  %s5765_s7 = smov 40  }
 0x6d3   :  { %4589 = vmatprep.subr.mxu0 %v2000_v39 }
 0x6d4   :  { %4590 = vmatpush3.msra.mxu0 %v2000_v39 }
 0x6d5   :  { %4591 = vmatprep.subr.mxu0 %v1999_v40 }
 0x6d6   :  { %4592 = vmatpush3.msra.mxu0 %v1999_v40 }
 0x6d7   :  { %4617 = vmatprep.subr.mxu0 %v4983_v11 }
 0x787   :  { %v4565_v52 = vpop.f32.mrf.mxu0 }
 0x788   :  { %v1844_v53 = vadd.f32 %v4565_v52, %v4228_v51 }
 0x789   :  { %v1838_v54 = vpop.f32.mrf.mxu0 }
 0x78a   :  { %v1848_v55 = vadd.f32 %v1844_v53, %v5169_v59  ;;  %v1839_v56 = vadd.f32 %v4228_v51, %v1838_v54  ;;  %v1900_v59 = vld [vmem:[%s5728_s12 + $0x18] sm:$0xff] }
 0x78b   :  { %4566 = vmatprep.subr.mxu1 %v1900_v59 }
 0x78c   :  { %v1847_v0 = vadd.f32 %v1839_v56, %v5167_v58  ;;  %v1854_v57 = vsel %vm237_vm3, %v1848_v55, 0.0  ;;  %v1860_v1 = vmul.f32 %v1848_v55, %v1848_v55  ;;  %v1899_v58 = vld [vmem:[%s5728_s12 + $0x10] sm:$0xff]  ;;  %4567 = vmatpush3.msra.mxu1 %v1900_v59  ;;  %v4236_v56 = vld [vmem:[%s5731_s15] ss:$0 sm:$0xff] }
 0x78d   :  { %1855 = vadd.xlane.f32.xlu1 %v1854_v57  ;;  %4568 = vmatprep.subr.mxu1 %v1899_v58 }
 0x78e   :  { %v1851_v60 = vsel %vm237_vm3, %v1847_v0, 0.0  ;;  %v1859_v61 = vmul.f32 %v1847_v0, %v1847_v0  ;;  %v1864_v2 = vsel %vm237_vm3, %v1860_v1, 0.0  ;;  %4569 = vmatpush3.msra.mxu1 %v1899_v58 }
 0x78f   :  { %1852 = vadd.xlane.f32.xlu0 %v1851_v60  ;;  %4570 = vmatprep.subr.mxu1 %v1898_v3 }
 0x790   :  { %v1861_v62 = vsel %vm237_vm3, %v1859_v61, 0.0  ;;  %4571 = vmatpush3.msra.mxu1 %v1898_v3 }
 0x791   :  { %4572 = vmatprep.subr.mxu1 %v1897_v4 }
 0x792   :  { %4573 = vmatpush3.msra.mxu1 %v1897_v4 }
 0x793   :  { %1862 = vadd.xlane.f32.xlu0 %v1861_v62 }
 0x797   :  { %1865 = vadd.xlane.f32.xlu0 %v1864_v2 }
 0x816   :  { %v1856_v7 = vpop.xlane.xlu1 %1855 }
 0x817   :  { %v1858_v9 = vmul.f32 0.03125, %v1856_v7  ;;  %v2148_v7 = vld [vmem:[#allocation5 + $0x30] sm:$0xff] }
 0x818   :  { %v1853_v5 = vpop.xlane.xlu0 %1852 }
 0x819   :  { %v1857_v6 = vmul.f32 0.03125, %v1853_v5  ;;  %v1870_v15 = vmul.f32 %v1858_v9, %v1858_v9  ;;  %v1874_v26 = vsub.f32 %v1848_v55, %v1858_v9  ;;  %v2146_v9 = vld [vmem:[#allocation5 + $0x20] sm:$0xff] }
 0x81b   :  { %v1869_v10 = vmul.f32 %v1857_v6, %v1857_v6  ;;  %v1873_v20 = vsub.f32 %v1847_v0, %v1857_v6  ;;  %v2149_v6 = vld [vmem:[#allocation5 + $0x38] sm:$0xff] }
 0x81c   :  { %v1863_v8 = vpop.xlane.xlu0 %1862  ;;  %4596 = vmatprep.subr.mxu1 %v2149_v6 }
 0x81d   :  { %v1867_v13 = vmul.f32 0.03125, %v1863_v8  ;;  %v2147_v8 = vld [vmem:[#allocation5 + $0x28] sm:$0xff] }
 0x81f   :  { %v1871_v63 = vsub.f32 %v1867_v13, %v1869_v10 }
 0x820   :  { %v1866_v14 = vpop.xlane.xlu0 %1865 }
 0x821   :  { %v1875_v16 = vadd.f32 1e-12, %v1871_v63  ;;  %v1868_v17 = vmul.f32 0.03125, %v1866_v14 }
 0x823   :  { %4810 = vrsqrt.f32 %v1875_v16  ;;  %v1872_v18 = vsub.f32 %v1868_v17, %v1870_v15 }
 0x825   :  { %v1876_v19 = vadd.f32 1e-12, %v1872_v18 }
 0x827   :  { %4812 = vrsqrt.f32 %v1876_v19 }
 0x830   :  { %v4811_v21 = vpop.eup %4810 }
 0x831   :  { %v1879_v24 = vmul.f32 %v4811_v21, %v1873_v20 }
 0x833   :  { %v1887_v27 = vmul.f32 %v4231_v23, %v1879_v24 }
 0x834   :  { %v4813_v28 = vpop.eup %4812 }
 0x835   :  { %v1880_v29 = vmul.f32 %v4813_v28, %v1874_v26  ;;  %v1895_v30 = vadd.f32 %v4232_v25, %v1887_v27 }
 0x837   :  { %v1888_v31 = vmul.f32 %v4231_v23, %v1880_v29  ;;  %4574 = vmatprep.mubr.msk.f32.mxu1 %vm237_vm3, %v1895_v30  ;;  %v4239_v29 = vld [vmem:[%s5732_s16] ss:$0 sm:$0xff] }
 0x839   :  { %v1896_v32 = vadd.f32 %v4232_v25, %v1888_v31 }
 0x83b   :  { %4575 = vmatmul.mubr.msk.f32.vlgmr.msra.gmra.mxu1 %vm237_vm3, %v1896_v32 }
 0x83c   :  { %4597 = vmatpush3.msra.mxu1 %v2149_v6 }
 0x83d   :  { %4598 = vmatprep.subr.mxu1 %v2148_v7 }
 0x83e   :  { %4599 = vmatpush3.msra.mxu1 %v2148_v7 }
 0x83f   :  { %4600 = vmatprep.subr.mxu1 %v2147_v8 }
 0x840   :  { %4601 = vmatpush3.msra.mxu1 %v2147_v8 }
 0x841   :  { %4602 = vmatprep.subr.mxu1 %v2146_v9 }
 0x842   :  { %4603 = vmatpush3.msra.mxu1 %v2146_v9 }
 0x843   :  { %4607 = vmatprep.subr.mxu1 %v4983_v11 }
 0x8fb   :  { %v4576_v42 = vpop.f32.mrf.mxu1 }
 0x8fc   :  { %v1986_v43 = vadd.f32 %v4576_v42, %v4233_v41 }
 0x8fd   :  { %v1980_v44 = vpop.f32.mrf.mxu1 }
 0x8fe   :  { %v1992_v45 = vmul.f32 0.70710677, %v1986_v43  ;;  %v1981_v46 = vadd.f32 %v4233_v41, %v1980_v44  ;;  %v1990_v53 = vmul.f32 0.5, %v1986_v43 }
 0x900   :  { %4814 = verf.f32 %v1992_v45  ;;  %v1991_v47 = vmul.f32 0.70710677, %v1981_v46  ;;  %v1989_v51 = vmul.f32 0.5, %v1981_v46 }
 0x902   :  { %4816 = verf.f32 %v1991_v47 }
 0x90d   :  { %v4815_v48 = vpop.eup %4814 }
 0x90e   :  { %v1996_v50 = vadd.f32 1.0, %v4815_v48 }
 0x90f   :  { %v4817_v49 = vpop.eup %4816 }
 0x910   :  { %v1995_v52 = vadd.f32 1.0, %v4817_v49  ;;  %v1998_v55 = vmul.f32 %v1996_v50, %v1990_v53 }
 0x912   :  { %v1997_v54 = vmul.f32 %v1995_v52, %v1989_v51 }
 0x914   :  { %4593 = vmatprep.mubr.msk.f32.mxu0 %vm153_vm0, %v1997_v54 }
 0x915   :  { %4594 = vmatmul.mubr.msk.f32.vlgmr.msra.gmra.mxu0 %vm153_vm0, %v1998_v55 }
 0x916   :  { %4619 = vmatprep.mubr.msk.f32.mxu0 %vm4984_vm4, %v4983_v11 }
 0x9d5   :  { %v4595_v0 = vpop.f32.mrf.mxu0 }
 0x9d6   :  { %v2092_v57 = vadd.f32 %v4595_v0, %v4236_v56 }
 0x9d7   :  { %v2086_v60 = vpop.f32.mrf.mxu0 }
 0x9d8   :  { %v2096_v61 = vadd.f32 %v2092_v57, %v1896_v32  ;;  %v2087_v62 = vadd.f32 %v4236_v56, %v2086_v60 }
 0x9da   :  { %v2095_v1 = vadd.f32 %v2087_v62, %v1895_v30  ;;  %v2102_v2 = vsel %vm237_vm3, %v2096_v61, 0.0  ;;  %v2108_v59 = vmul.f32 %v2096_v61, %v2096_v61 }
 0x9db   :  { %2103 = vadd.xlane.f32.xlu0 %v2102_v2 }
 0x9dc   :  { %v2099_v58 = vsel %vm237_vm3, %v2095_v1, 0.0  ;;  %v2107_v3 = vmul.f32 %v2095_v1, %v2095_v1  ;;  %v2112_v4 = vsel %vm237_vm3, %v2108_v59, 0.0 }
 0x9dd   :  { %2100 = vadd.xlane.f32.xlu1 %v2099_v58 }
 0x9de   :  { %v2109_v5 = vsel %vm237_vm3, %v2107_v3, 0.0 }
 0x9df   :  { %2113 = vadd.xlane.f32.xlu0 %v2112_v4 }
 0x9e1   :  { %2110 = vadd.xlane.f32.xlu1 %v2109_v5 }
 0xa64   :  { %v2104_v10 = vpop.xlane.xlu0 %2103 }
 0xa65   :  { %v2106_v13 = vmul.f32 0.03125, %v2104_v10 }
 0xa66   :  { %v2101_v63 = vpop.xlane.xlu1 %2100 }
 0xa67   :  { %v2105_v14 = vmul.f32 0.03125, %v2101_v63  ;;  %v2118_v16 = vmul.f32 %v2106_v13, %v2106_v13  ;;  %v2122_v26 = vsub.f32 %v2096_v61, %v2106_v13 }
 0xa68   :  { %v2114_v15 = vpop.xlane.xlu0 %2113 }
 0xa69   :  { %v2116_v17 = vmul.f32 0.03125, %v2114_v15  ;;  %v2117_v19 = vmul.f32 %v2105_v14, %v2105_v14  ;;  %v2121_v28 = vsub.f32 %v2095_v1, %v2105_v14 }
 0xa6a   :  { %v2111_v18 = vpop.xlane.xlu1 %2110 }
 0xa6b   :  { %v2120_v20 = vsub.f32 %v2116_v17, %v2118_v16  ;;  %v2115_v21 = vmul.f32 0.03125, %v2111_v18 }
 0xa6d   :  { %v2124_v23 = vadd.f32 1e-12, %v2120_v20  ;;  %v2119_v24 = vsub.f32 %v2115_v21, %v2117_v19 }
 0xa6f   :  { %4818 = vrsqrt.f32 %v2124_v23  ;;  %v2123_v25 = vadd.f32 1e-12, %v2119_v24 }
 0xa71   :  { %4820 = vrsqrt.f32 %v2123_v25 }
 0xa7c   :  { %v4819_v27 = vpop.eup %4818 }
 0xa7d   :  { %v2128_v30 = vmul.f32 %v4819_v27, %v2122_v26 }
 0xa7e   :  { %v4821_v31 = vpop.eup %4820 }
 0xa7f   :  { %v2127_v32 = vmul.f32 %v4821_v31, %v2121_v28  ;;  %v2136_v12 = vmul.f32 %v4239_v29, %v2128_v30 }
 0xa81   :  { %v2135_v34 = vmul.f32 %v4239_v29, %v2127_v32  ;;  %v5437_v37 = vadd.f32 %v4240_v33, %v2136_v12 }
 0xa83   :  { %v5435_v35 = vadd.f32 %v4240_v33, %v2135_v34 }
 0xa85   :  { %4604 = vmatprep.mubr.msk.f32.mxu1 %vm237_vm3, %v5435_v35 }
 0xa86   :  { %4605 = vmatmul.mubr.msk.f32.vlgmr.msra.gmra.mxu1 %vm237_vm3, %v5437_v37 }
 0xa87   :  { %4609 = vmatprep.mubr.msk.f32.mxu1 %vm4984_vm4, %v4983_v11 }
 0xb46   :  { %v4606_v39 = vpop.f32.mrf.mxu1 }
 0xb47   :  { %v5448_v40 = vadd.f32 %v4606_v39, %v4242_v38 }
 0xb48   :  { %v2230_v41 = vpop.f32.mrf.mxu1 }
 0xb49   :  { %2639 = vrot.lane.b32.xlu0 %v5448_v40, %s4988_s18  ;;  %2559 = vrot.lane.b32.xlu1 %v5448_v40, %s4986_s2  ;;  %v5454_v42 = vadd.f32 %v4242_v38, %v2230_v41 }
 0xb4d   :  { %2320 = vrot.lane.b32.xlu0 %v5454_v42, %s4988_s18  ;;  %2240 = vrot.lane.b32.xlu1 %v5454_v42, %s4986_s2  ;;  %s5767_s2 = smov 8   ;;  %s5769_s18 = smov 24  }
 0xb51   :  { %2480 = vrot.lane.b32.xlu0 %v5454_v42, %s4985_s26  ;;  %2318 = vrot.lane.b32.xlu1 %v5454_v42, %s4990_s3 }
 0xb55   :  { %2478 = vrot.lane.b32.xlu0 %v5454_v42, %s4991_s29  ;;  %2400 = vrot.lane.b32.xlu1 %v5454_v42, %s4987_s27 }
 0xb59   :  { %2719 = vrot.lane.b32.xlu0 %v5448_v40, %s4987_s27  ;;  %2398 = vrot.lane.b32.xlu1 %v5454_v42, %s4989_s0  ;;  %s5768_s27 = smov 16  }
 0xb5d   :  { %2717 = vrot.lane.b32.xlu0 %v5448_v40, %s4989_s0  ;;  %2637 = vrot.lane.b32.xlu1 %v5448_v40, %s4990_s3 }
 0xb61   :  { %2799 = vrot.lane.b32.xlu1 %v5448_v40, %s4985_s26  ;;  %s5766_s26 = smov 56  }
 0xb65   :  { %2797 = vrot.lane.b32.xlu1 %v5448_v40, %s4991_s29 }
 0xbbb   :  { %v2640_v43 = vpop.permute.xlu0 %2639  ;;  %v2560_v44 = vpop.permute.xlu1 %2559 }
 0xbbf   :  { %v2321_v45 = vpop.permute.xlu0 %2320  ;;  %v2241_v46 = vpop.permute.xlu1 %2240 }
 0xbc0   :  { %4608 = vmatpush3.xpose.msk.msra.mxu1 %vm383_vm5, %v2241_v46 }
 0xbc1   :  { %4612 = vmatprep.subr.mxu1 %v4983_v11 }
 0xbc3   :  { %v2481_v47 = vpop.permute.xlu0 %2480  ;;  %4610 = vmatmul.mubr.msk.f32.vlgmr.msra.gmra.mxu1 %vm383_vm5, %v5454_v42  ;;  %v2319_v48 = vpop.permute.xlu1 %2318 }
 0xbc4   :  { %4613 = vmatpush3.xpose.msk.msra.mxu1 %vm383_vm5, %v2321_v45  ;;  %4614 = vmatprep.mubr.msk.f32.mxu1 %vm4984_vm4, %v4983_v11 }
 0xbc5   :  { %4622 = vmatprep.subr.mxu1 %v4983_v11 }
 0xbc7   :  { %v2479_v49 = vpop.permute.xlu0 %2478  ;;  %4615 = vmatmul.mubr.msk.f32.vlgmr.msra.gmra.mxu1 %vm383_vm5, %v2319_v48  ;;  %v2401_v50 = vpop.permute.xlu1 %2400 }
 0xbc8   :  { %4618 = vmatpush3.xpose.msk.msra.mxu0 %vm383_vm5, %v2401_v50  ;;  %4623 = vmatpush3.xpose.msk.msra.mxu1 %vm383_vm5, %v2481_v47 }
 0xbc9   :  { %4624 = vmatprep.mubr.msk.f32.mxu1 %vm4984_vm4, %v4983_v11  ;;  %4627 = vmatprep.subr.mxu0 %v4983_v11 }
 0xbca   :  { %4632 = vmatprep.subr.mxu1 %v4983_v11 }
 0xbcb   :  { %4625 = vmatmul.mubr.msk.f32.vlgmr.msra.gmra.mxu1 %vm383_vm5, %v2479_v49  ;;  %v2399_v51 = vpop.permute.xlu1 %2398  ;;  %v2720_v52 = vpop.permute.xlu0 %2719 }
 0xbcc   :  { %4620 = vmatmul.mubr.msk.f32.vlgmr.msra.gmra.mxu0 %vm383_vm5, %v2399_v51  ;;  %4633 = vmatpush3.xpose.msk.msra.mxu1 %vm383_vm5, %v2640_v43 }
 0xbcd   :  { %4628 = vmatpush3.xpose.msk.msra.mxu0 %vm383_vm5, %v2560_v44  ;;  %4629 = vmatprep.mubr.msk.f32.mxu0 %vm4984_vm4, %v4983_v11 }
 0xbce   :  { %4634 = vmatprep.mubr.msk.f32.mxu1 %vm4984_vm4, %v4983_v11  ;;  %4637 = vmatprep.subr.mxu0 %v4983_v11 }
 0xbcf   :  { %v2638_v53 = vpop.permute.xlu1 %2637  ;;  %4642 = vmatprep.subr.mxu1 %v4983_v11  ;;  %v2718_v54 = vpop.permute.xlu0 %2717 }
 0xbd0   :  { %4630 = vmatmul.mubr.msk.f32.vlgmr.msra.gmra.mxu0 %vm383_vm5, %v5448_v40  ;;  %4635 = vmatmul.mubr.msk.f32.vlgmr.msra.gmra.mxu1 %vm383_vm5, %v2638_v53 }
 0xbd1   :  { %4638 = vmatpush3.xpose.msk.msra.mxu0 %vm383_vm5, %v2720_v52  ;;  %4639 = vmatprep.mubr.msk.f32.mxu0 %vm4984_vm4, %v4983_v11 }
 0xbd2   :  { %4644 = vmatprep.mubr.msk.f32.mxu1 %vm4984_vm4, %v4983_v11  ;;  %4647 = vmatprep.subr.mxu0 %v4983_v11 }
 0xbd3   :  { %v2800_v55 = vpop.permute.xlu1 %2799 }
 0xbd4   :  { %4640 = vmatmul.mubr.msk.f32.vlgmr.msra.gmra.mxu0 %vm383_vm5, %v2718_v54  ;;  %4643 = vmatpush3.xpose.msk.msra.mxu1 %vm383_vm5, %v2800_v55 }
 0xbd5   :  { %4652 = vmatprep.subr.mxu1 %v4983_v11  ;;  %4649 = vmatprep.mubr.msk.f32.mxu0 %vm4984_vm4, %v4983_v11 }
 0xbd7   :  { %v2798_v56 = vpop.permute.xlu1 %2797 }
 0xbd8   :  { %4645 = vmatmul.mubr.msk.f32.vlgmr.msra.gmra.mxu1 %vm383_vm5, %v2798_v56 }
 0xbd9   :  { %4654 = vmatprep.mubr.msk.f32.mxu1 %vm4984_vm4, %v4983_v11 }
 0xc83   :  { %v2312_v0 = vpop.f32.mrf.mxu1 }
 0xc84   :  { %v2316_v57 = vmul.f32 0.35355338, %v2312_v0 }
 0xc85   :  { %v4611_v60 = vpop.f32.mrf.mxu1 }
 0xc86   :  { %v2317_v61 = vadd.f32 %v2316_v57, %v5260_v22 }
 0xc87   :  { %v2392_v62 = vpop.f32.mrf.mxu1 }
 0xc88   :  { %v2396_v1 = vmul.f32 0.35355338, %v2392_v62  ;;  %v2877_v2 = vsel %vm383_vm5, %v2317_v61, -inf }
 0xc89   :  { %2878 = vmax.xlane.f32.xlu0 %v2877_v2  ;;  %v4616_v59 = vpop.f32.mrf.mxu1 }
 0xc8a   :  { %v2397_v58 = vadd.f32 %v2396_v1, %v5260_v22 }
 0xc8b   :  { %v2552_v3 = vpop.f32.mrf.mxu1 }
 0xc8c   :  { %v2472_v4 = vpop.f32.mrf.mxu0  ;;  %v2880_v5 = vsel %vm383_vm5, %v2397_v58, -inf  ;;  %v2556_v6 = vmul.f32 0.35355338, %v2552_v3 }
 0xc8d   :  { %v2476_v7 = vmul.f32 0.35355338, %v2472_v4  ;;  %2881 = vmax.xlane.f32.xlu1 %v2880_v5  ;;  %v4626_v8 = vpop.f32.mrf.mxu1 }
 0xc8e   :  { %v4621_v9 = vpop.f32.mrf.mxu0  ;;  %v2557_v17 = vadd.f32 %v2556_v6, %v5260_v22 }
 0xc8f   :  { %v2477_v10 = vadd.f32 %v2476_v7, %v5260_v22 }
 0xc90   :  { %v2631_v13 = vpop.f32.mrf.mxu0  ;;  %v2711_v63 = vpop.f32.mrf.mxu1  ;;  %v2886_v24 = vsel %vm383_vm5, %v2557_v17, -inf }
 0xc91   :  { %v2635_v14 = vmul.f32 0.35355338, %v2631_v13  ;;  %v2715_v15 = vmul.f32 0.35355338, %v2711_v63  ;;  %v2883_v16 = vsel %vm383_vm5, %v2477_v10, -inf }
 0xc92   :  { %2884 = vmax.xlane.f32.xlu0 %v2883_v16  ;;  %v4631_v18 = vpop.f32.mrf.mxu0  ;;  %v4636_v19 = vpop.f32.mrf.mxu1 }
 0xc93   :  { %v2636_v20 = vadd.f32 %v2635_v14, %v5266_v36  ;;  %v2716_v26 = vadd.f32 %v2715_v15, %v5266_v36 }
 0xc94   :  { %v2791_v21 = vpop.f32.mrf.mxu0 }
 0xc95   :  { %v2795_v23 = vmul.f32 0.35355338, %v2791_v21  ;;  %v2889_v25 = vsel %vm383_vm5, %v2636_v20, -inf  ;;  %v2892_v31 = vsel %vm383_vm5, %v2716_v26, -inf }
 0xc96   :  { %2887 = vmax.xlane.f32.xlu0 %v2886_v24  ;;  %2890 = vmax.xlane.f32.xlu1 %v2889_v25  ;;  %v4641_v27 = vpop.f32.mrf.mxu0 }
 0xc97   :  { %v2796_v28 = vadd.f32 %v2795_v23, %v5266_v36 }
 0xc98   :  { %v2871_v29 = vpop.f32.mrf.mxu1 }
 0xc99   :  { %v2875_v22 = vmul.f32 0.35355338, %v2871_v29  ;;  %v2895_v30 = vsel %vm383_vm5, %v2796_v28, -inf }
 0xc9a   :  { %2896 = vmax.xlane.f32.xlu1 %v2895_v30  ;;  %2893 = vmax.xlane.f32.xlu0 %v2892_v31  ;;  %v4646_v32 = vpop.f32.mrf.mxu1 }
 0xc9b   :  { %v2876_v12 = vadd.f32 %v2875_v22, %v5266_v36 }
 0xc9d   :  { %v2898_v33 = vsel %vm383_vm5, %v2876_v12, -inf }
 0xc9e   :  { %2899 = vmax.xlane.f32.xlu0 %v2898_v33 }
 0xcab   :  { %2965 = vrot.lane.b32.xlu1 %v5454_v42, %s4992_s5 }
 0xcaf   :  { %3117 = vrot.lane.b32.xlu1 %v5454_v42, %s4993_s30 }
 0xcb3   :  { %3193 = vrot.lane.b32.xlu1 %v5454_v42, %s5765_s7 }
 0xcb4   :  { %3041 = vrot.lane.b32.xlu0 %v5454_v42, %s5766_s26 }
 0xcb7   :  { %3360 = vrot.lane.b32.xlu1 %v5448_v40, %s5766_s26 }
 0xcb8   :  { %3284 = vrot.lane.b32.xlu0 %v5448_v40, %s4992_s5 }
 0xd12   :  { %v2879_v36 = vpop.xlane.xlu0 %2878 }
 0xd13   :  { %v2901_v34 = vsub.f32 %v2317_v61, %v2879_v36 }
 0xd15   :  { %v2909_v38 = vmul.f32 1.442695, %v2901_v34 }
 0xd16   :  { %v2882_v39 = vpop.xlane.xlu1 %2881 }
 0xd17   :  { %4822 = vpow2.f32 %v2909_v38  ;;  %v2902_v41 = vsub.f32 %v2397_v58, %v2882_v39 }
 0xd19   :  { %v2911_v43 = vmul.f32 1.442695, %v2902_v41 }
 0xd1b   :  { %4824 = vpow2.f32 %v2911_v43  ;;  %v2885_v44 = vpop.xlane.xlu0 %2884 }
 0xd1c   :  { %v2903_v45 = vsub.f32 %v2477_v10, %v2885_v44 }
 0xd1e   :  { %v2913_v46 = vmul.f32 1.442695, %v2903_v45 }
 0xd1f   :  { %v2888_v47 = vpop.xlane.xlu0 %2887  ;;  %v2891_v48 = vpop.xlane.xlu1 %2890 }
 0xd20   :  { %4826 = vpow2.f32 %v2913_v46  ;;  %v2904_v42 = vsub.f32 %v2557_v17, %v2888_v47  ;;  %v2905_v49 = vsub.f32 %v2636_v20, %v2891_v48 }
 0xd22   :  { %v2915_v50 = vmul.f32 1.442695, %v2904_v42  ;;  %v2917_v51 = vmul.f32 1.442695, %v2905_v49 }
 0xd23   :  { %v2894_v52 = vpop.xlane.xlu0 %2893  ;;  %v2897_v53 = vpop.xlane.xlu1 %2896 }
 0xd24   :  { %v4823_v54 = vpop.eup %4822  ;;  %4828 = vpow2.f32 %v2915_v50  ;;  %v2906_v55 = vsub.f32 %v2716_v26, %v2894_v52  ;;  %v2907_v56 = vsub.f32 %v2796_v28, %v2897_v53  ;;  %v3607_v50 = vld [vmem:[#allocation7 + $0x38] sm:$0xff]  ;;  %v3606_v52 = vld [vmem:[#allocation7 + $0x30] sm:$0xff]  ;;  %v3605_v53 = vld [vmem:[#allocation7 + $0x28] sm:$0xff] }
 0xd25   :  { %4830 = vpow2.f32 %v2917_v51  ;;  %v2925_v0 = vsel %vm383_vm5, %v4823_v54, 0.0 }
 0xd26   :  { %v2919_v57 = vmul.f32 1.442695, %v2906_v55  ;;  %v2921_v60 = vmul.f32 1.442695, %v2907_v56  ;;  %2926 = vadd.xlane.f32.xlu1 %v2925_v0  ;;  %v3604_v56 = vld [vmem:[#allocation7 + $0x20] sm:$0xff] }
 0xd27   :  { %v2900_v61 = vpop.xlane.xlu0 %2899  ;;  %v2966_v62 = vpop.permute.xlu1 %2965 }
 0xd28   :  { %v4825_v1 = vpop.eup %4824  ;;  %4832 = vpow2.f32 %v2919_v57  ;;  %v2908_v2 = vsub.f32 %v2876_v12, %v2900_v61  ;;  %4648 = vmatpush3.msra.mxu0 %v2966_v62 }
 0xd29   :  { %4834 = vpow2.f32 %v2921_v60  ;;  %v2928_v59 = vsel %vm383_vm5, %v4825_v1, 0.0  ;;  %4657 = vmatprep.subr.mxu0 %v4983_v11 }
 0xd2a   :  { %v2923_v58 = vmul.f32 1.442695, %v2908_v2  ;;  %2929 = vadd.xlane.f32.xlu0 %v2928_v59 }
 0xd2b   :  { %v3042_v3 = vpop.permute.xlu0 %3041  ;;  %v3118_v17 = vpop.permute.xlu1 %3117 }
 0xd2c   :  { %4836 = vpow2.f32 %v2923_v58  ;;  %4653 = vmatpush3.msra.mxu1 %v3042_v3 }
 0xd2d   :  { %v4827_v4 = vpop.eup %4826  ;;  %4662 = vmatprep.subr.mxu1 %v4983_v11 }
 0xd2e   :  { %v2931_v5 = vsel %vm383_vm5, %v4827_v4, 0.0 }
 0xd2f   :  { %2932 = vadd.xlane.f32.xlu1 %v2931_v5  ;;  %v3194_v18 = vpop.permute.xlu1 %3193  ;;  %v3285_v20 = vpop.permute.xlu0 %3284 }
 0xd31   :  { %v4829_v6 = vpop.eup %4828 }
 0xd32   :  { %v4831_v7 = vpop.eup %4830  ;;  %v2934_v8 = vsel %vm383_vm5, %v4829_v6, 0.0 }
 0xd33   :  { %2935 = vadd.xlane.f32.xlu0 %v2934_v8  ;;  %v2937_v9 = vsel %vm383_vm5, %v4831_v7, 0.0  ;;  %v3361_v19 = vpop.permute.xlu1 %3360 }
 0xd34   :  { %2938 = vadd.xlane.f32.xlu1 %v2937_v9 }
 0xd35   :  { %v4833_v10 = vpop.eup %4832 }
 0xd36   :  { %v5557_v13 = vpop.eup %4834  ;;  %v2940_v63 = vsel %vm383_vm5, %v4833_v10, 0.0 }
 0xd37   :  { %2941 = vadd.xlane.f32.xlu0 %v2940_v63  ;;  %v2943_v14 = vsel %vm383_vm5, %v5557_v13, 0.0 }
 0xd38   :  { %2944 = vadd.xlane.f32.xlu1 %v2943_v14 }
 0xd39   :  { %v5562_v15 = vpop.eup %4836 }
 0xd3a   :  { %v2946_v16 = vsel %vm383_vm5, %v5562_v15, 0.0 }
 0xd3b   :  { %2947 = vadd.xlane.f32.xlu0 %v2946_v16 }
 0xd49   :  { %3512 = vrot.lane.b32.xlu1 %v5448_v40, %s5765_s7 }
 0xd51   :  { %3436 = vrot.lane.b32.xlu0 %v5448_v40, %s4993_s30 }
 0xdaf   :  { %v2927_v21 = vpop.xlane.xlu1 %2926 }
 0xdb0   :  { %4838 = vrcp.f32 %v2927_v21 }
 0xdb3   :  { %v2930_v23 = vpop.xlane.xlu0 %2929 }
 0xdb4   :  { %4840 = vrcp.f32 %v2930_v23 }
 0xdb8   :  { %v2933_v24 = vpop.xlane.xlu1 %2932 }
 0xdb9   :  { %4842 = vrcp.f32 %v2933_v24 }
 0xdbc   :  { %v2936_v25 = vpop.xlane.xlu0 %2935 }
 0xdbd   :  { %v4839_v26 = vpop.eup %4838  ;;  %4844 = vrcp.f32 %v2936_v25  ;;  %v2939_v27 = vpop.xlane.xlu1 %2938 }
 0xdbe   :  { %4846 = vrcp.f32 %v2939_v27  ;;  %v2957_v28 = vmul.f32 %v4839_v26, %v4823_v54 }
 0xdc0   :  { %v2942_v29 = vpop.xlane.xlu0 %2941  ;;  %4650 = vmatmul.mubr.msk.f32.vlgmr.msra.gmra.mxu0 %vm383_vm5, %v2957_v28 }
 0xdc1   :  { %v4841_v40 = vpop.eup %4840  ;;  %4848 = vrcp.f32 %v2942_v29  ;;  %4658 = vmatpush3.msra.mxu0 %v3118_v17  ;;  %v2945_v22 = vpop.xlane.xlu1 %2944  ;;  %4659 = vmatprep.mubr.msk.f32.mxu0 %vm4984_vm4, %v4983_v11 }
 0xdc2   :  { %4850 = vrcp.f32 %v2945_v22  ;;  %v2958_v30 = vmul.f32 %v4841_v40, %v4825_v1  ;;  %4667 = vmatprep.subr.mxu0 %v4983_v11 }
 0xdc4   :  { %4655 = vmatmul.mubr.msk.f32.vlgmr.msra.gmra.mxu1 %vm383_vm5, %v2958_v30  ;;  %v2948_v31 = vpop.xlane.xlu0 %2947  ;;  %v4278_v30 = vld [vmem:[%s5728_s12 + $0x28] sm:$0xff] }
 0xdc5   :  { %4852 = vrcp.f32 %v2948_v31  ;;  %4663 = vmatpush3.msra.mxu1 %v3194_v18  ;;  %4664 = vmatprep.mubr.msk.f32.mxu1 %vm4984_vm4, %v4983_v11  ;;  %v3513_v46 = vpop.permute.xlu1 %3512  ;;  %v4270_v18 = vld [vmem:[%s5725_s9 + $0x1] ss:$0 sm:$0xff] }
 0xdc6   :  { %v4843_v32 = vpop.eup %4842  ;;  %4672 = vmatprep.subr.mxu1 %v4983_v11  ;;  %v4277_v31 = vld [vmem:[%s5728_s12 + $0x20] sm:$0xff] }
 0xdc7   :  { %v2959_v12 = vmul.f32 %v4843_v32, %v4827_v4 }
 0xdc8   :  { %v3437_v41 = vpop.permute.xlu0 %3436 }
 0xdc9   :  { %4660 = vmatmul.mubr.msk.f32.vlgmr.msra.gmra.mxu0 %vm383_vm5, %v2959_v12 }
 0xdca   :  { %v4845_v33 = vpop.eup %4844  ;;  %4668 = vmatpush3.msra.mxu0 %v3285_v20  ;;  %4669 = vmatprep.mubr.msk.f32.mxu0 %vm4984_vm4, %v4983_v11 }
 0xdcb   :  { %v4847_v36 = vpop.eup %4846  ;;  %4677 = vmatprep.subr.mxu0 %v4983_v11  ;;  %v2960_v34 = vmul.f32 %v4845_v33, %v4829_v6 }
 0xdcc   :  { %v2961_v38 = vmul.f32 %v4847_v36, %v4831_v7 }
 0xdcd   :  { %4665 = vmatmul.mubr.msk.f32.vlgmr.msra.gmra.mxu1 %vm383_vm5, %v2960_v34 }
 0xdce   :  { %v4849_v39 = vpop.eup %4848  ;;  %4670 = vmatmul.mubr.msk.f32.vlgmr.msra.gmra.mxu0 %vm383_vm5, %v2961_v38  ;;  %4673 = vmatpush3.msra.mxu1 %v3361_v19 }
 0xdcf   :  { %v4851_v43 = vpop.eup %4850  ;;  %4678 = vmatpush3.msra.mxu0 %v3437_v41  ;;  %4674 = vmatprep.mubr.msk.f32.mxu1 %vm4984_vm4, %v4983_v11  ;;  %v2962_v44 = vmul.f32 %v4849_v39, %v4833_v10 }
 0xdd0   :  { %4679 = vmatprep.mubr.msk.f32.mxu0 %vm4984_vm4, %v4983_v11  ;;  %4682 = vmatprep.subr.mxu1 %v4983_v11  ;;  %v2963_v45 = vmul.f32 %v4851_v43, %v5557_v13 }
 0xdd1   :  { %4675 = vmatmul.mubr.msk.f32.vlgmr.msra.gmra.mxu1 %vm383_vm5, %v2962_v44  ;;  %4687 = vmatprep.subr.mxu0 %v3607_v50 }
 0xdd2   :  { %v4853_v47 = vpop.eup %4852  ;;  %4680 = vmatmul.mubr.msk.f32.vlgmr.msra.gmra.mxu0 %vm383_vm5, %v2963_v45  ;;  %4683 = vmatpush3.msra.mxu1 %v3513_v46 }
 0xdd3   :  { %4684 = vmatprep.mubr.msk.f32.mxu1 %vm4984_vm4, %v4983_v11  ;;  %v2964_v48 = vmul.f32 %v4853_v47, %v5562_v15  ;;  %4688 = vmatpush3.msra.mxu0 %v3607_v50  ;;  %v4275_v50 = vld [vmem:[%s5726_s10 + $0x1] ss:$0 sm:$0xff] }
 0xdd4   :  { %4689 = vmatprep.subr.mxu0 %v3606_v52 }
 0xdd5   :  { %4685 = vmatmul.mubr.msk.f32.vlgmr.msra.gmra.mxu1 %vm383_vm5, %v2964_v48  ;;  %4690 = vmatpush3.msra.mxu0 %v3606_v52  ;;  %v4276_v52 = vld [vmem:[%s5727_s11 + $0x1] ss:$0 sm:$0xff] }
 0xdd6   :  { %4691 = vmatprep.subr.mxu0 %v3605_v53 }
 0xdd7   :  { %4692 = vmatpush3.msra.mxu0 %v3605_v53 }
 0xdd8   :  { %4693 = vmatprep.subr.mxu0 %v3604_v56 }
 0xdd9   :  { %4694 = vmatpush3.msra.mxu0 %v3604_v56 }
 0xe80   :  { %v3037_v42 = vpop.f32.mrf.mxu0 }
 0xe82   :  { %v4651_v49 = vpop.f32.mrf.mxu0 }
 0xe84   :  { %v3113_v51 = vpop.f32.mrf.mxu1 }
 0xe85   :  { %3270 = vrot.lane.b32.xlu0 %v3113_v51, %s5767_s2 }
 0xe86   :  { %v4656_v54 = vpop.f32.mrf.mxu1 }
 0xe89   :  { %v3189_v55 = vpop.f32.mrf.mxu0 }
 0xe8a   :  { %3274 = vrot.lane.b32.xlu1 %v3189_v55, %s5768_s27 }
 0xe8b   :  { %v4661_v0 = vpop.f32.mrf.mxu0 }
 0xe8d   :  { %v3265_v57 = vpop.f32.mrf.mxu1 }
 0xe8e   :  { %v3356_v60 = vpop.f32.mrf.mxu0  ;;  %3278 = vrot.lane.b32.xlu1 %v3265_v57, %s5769_s18 }
 0xe8f   :  { %v4666_v61 = vpop.f32.mrf.mxu1 }
 0xe90   :  { %v4671_v62 = vpop.f32.mrf.mxu0  ;;  %v4292_v61 = vld [vmem:[%s5730_s14 + $0x78] sm:$0xff] }
 0xe91   :  { %v3432_v1 = vpop.f32.mrf.mxu1  ;;  %4709 = vmatprep.subr.mxu0 %v4292_v61  ;;  %v4291_v62 = vld [vmem:[%s5730_s14 + $0x70] sm:$0xff] }
 0xe92   :  { %v3508_v2 = vpop.f32.mrf.mxu0  ;;  %3589 = vrot.lane.b32.xlu0 %v3432_v1, %s5767_s2  ;;  %v4290_v1 = vld [vmem:[%s5730_s14 + $0x68] sm:$0xff] }
 0xe93   :  { %v4676_v59 = vpop.f32.mrf.mxu1 }
 0xe94   :  { %v4681_v58 = vpop.f32.mrf.mxu0  ;;  %v4288_v59 = vld [vmem:[%s5730_s14 + $0x58] sm:$0xff] }
 0xe95   :  { %v3584_v3 = vpop.f32.mrf.mxu1  ;;  %v4287_v58 = vld [vmem:[%s5730_s14 + $0x50] sm:$0xff] }
 0xe96   :  { %3593 = vrot.lane.b32.xlu0 %v3508_v2, %s5768_s27  ;;  %3597 = vrot.lane.b32.xlu1 %v3584_v3, %s5769_s18  ;;  %v4289_v2 = vld [vmem:[%s5730_s14 + $0x60] sm:$0xff]  ;;  %v4286_v3 = vld [vmem:[%s5730_s14 + $0x48] sm:$0xff] }
 0xe97   :  { %v4686_v4 = vpop.f32.mrf.mxu1 }
 0xe98   :  { %v4285_v4 = vld [vmem:[%s5730_s14 + $0x40] sm:$0xff] }
 0xef7   :  { %v3271_v5 = vpop.permute.xlu0 %3270 }
 0xef8   :  { %v3281_v7 = vsel %vm383_vm5, %v3037_v42, %v3271_v5  ;;  %v4282_v5 = vld [vmem:[%s5729_s13 + $0x1] ss:$0 sm:$0xff] }
 0xefc   :  { %v3275_v6 = vpop.permute.xlu1 %3274 }
 0xefd   :  { %v3282_v8 = vsel %vm1432_vm6, %v3281_v7, %v3275_v6 }
 0xf00   :  { %v3279_v9 = vpop.permute.xlu1 %3278 }
 0xf01   :  { %v3283_v10 = vsel %vm1434_vm7, %v3282_v8, %v3279_v9 }
 0xf02   :  { %4695 = vmatprep.mubr.msk.f32.mxu0 %vm237_vm3, %v3283_v10 }
 0xf04   :  { %v3590_v13 = vpop.permute.xlu0 %3589 }
 0xf05   :  { %v3600_v63 = vsel %vm383_vm5, %v3356_v60, %v3590_v13 }
 0xf08   :  { %v3594_v14 = vpop.permute.xlu0 %3593  ;;  %v3598_v15 = vpop.permute.xlu1 %3597 }
 0xf09   :  { %v3601_v16 = vsel %vm1432_vm6, %v3600_v63, %v3594_v14 }
 0xf0a   :  { %v3602_v17 = vsel %vm1434_vm7, %v3601_v16, %v3598_v15 }
 0xf0b   :  { %4696 = vmatmul.mubr.msk.f32.vlgmr.msra.gmra.mxu0 %vm237_vm3, %v3602_v17 }
 0xf0c   :  { %4710 = vmatpush3.msra.mxu0 %v4292_v61 }
 0xf0d   :  { %4711 = vmatprep.subr.mxu0 %v4291_v62 }
 0xf0e   :  { %4712 = vmatpush3.msra.mxu0 %v4291_v62 }
 0xf0f   :  { %4713 = vmatprep.subr.mxu0 %v4290_v1 }
 0xf10   :  { %4714 = vmatpush3.msra.mxu0 %v4290_v1 }
 0xf11   :  { %4715 = vmatprep.subr.mxu0 %v4289_v2 }
 0xf12   :  { %4716 = vmatpush3.msra.mxu0 %v4289_v2 }
 0xf13   :  { %4717 = vmatprep.subr.mxu0 %v4288_v59 }
 0xf14   :  { %4718 = vmatpush3.msra.mxu0 %v4288_v59 }
 0xf15   :  { %4719 = vmatprep.subr.mxu0 %v4287_v58 }
 0xf16   :  { %4720 = vmatpush3.msra.mxu0 %v4287_v58  ;;  %v4096_v58 = vld [vmem:[%s5736_s20 + $0x18] sm:$0xff] }
 0xf17   :  { %4721 = vmatprep.subr.mxu0 %v4286_v3 }
 0xf18   :  { %4722 = vmatpush3.msra.mxu0 %v4286_v3  ;;  %v4095_v3 = vld [vmem:[%s5736_s20 + $0x10] sm:$0xff] }
 0xf19   :  { %4723 = vmatprep.subr.mxu0 %v4285_v4 }
 0xf1a   :  { %4724 = vmatpush3.msra.mxu0 %v4285_v4  ;;  %v4094_v4 = vld [vmem:[%s5736_s20 + $0x8] sm:$0xff] }
 0xfcb   :  { %v4697_v19 = vpop.f32.mrf.mxu0 }
 0xfcc   :  { %v3694_v20 = vadd.f32 %v4697_v19, %v4270_v18 }
 0xfcd   :  { %v3688_v21 = vpop.f32.mrf.mxu0 }
 0xfce   :  { %v3698_v23 = vadd.f32 %v3694_v20, %v5437_v37  ;;  %v3689_v24 = vadd.f32 %v4270_v18, %v3688_v21  ;;  %v4280_v37 = vld [vmem:[%s5728_s12 + $0x38] sm:$0xff]  ;;  %v4294_v21 = vld [vmem:[%s5731_s15 + $0x1] ss:$0 sm:$0xff] }
 0xfcf   :  { %4698 = vmatprep.subr.mxu1 %v4280_v37 }
 0xfd0   :  { %v3697_v25 = vadd.f32 %v3689_v24, %v5435_v35  ;;  %v3706_v26 = vsel %vm237_vm3, %v3698_v23, 0.0  ;;  %v3712_v40 = vmul.f32 %v3698_v23, %v3698_v23  ;;  %v4279_v35 = vld [vmem:[%s5728_s12 + $0x30] sm:$0xff]  ;;  %4699 = vmatpush3.msra.mxu1 %v4280_v37 }
 0xfd1   :  { %3707 = vadd.xlane.f32.xlu1 %v3706_v26  ;;  %4700 = vmatprep.subr.mxu1 %v4279_v35 }
 0xfd2   :  { %v3703_v27 = vsel %vm237_vm3, %v3697_v25, 0.0  ;;  %v3711_v28 = vmul.f32 %v3697_v25, %v3697_v25  ;;  %v3716_v22 = vsel %vm237_vm3, %v3712_v40, 0.0  ;;  %4701 = vmatpush3.msra.mxu1 %v4279_v35 }
 0xfd3   :  { %3704 = vadd.xlane.f32.xlu0 %v3703_v27  ;;  %4702 = vmatprep.subr.mxu1 %v4278_v30 }
 0xfd4   :  { %v3713_v29 = vsel %vm237_vm3, %v3711_v28, 0.0  ;;  %4703 = vmatpush3.msra.mxu1 %v4278_v30 }
 0xfd5   :  { %4704 = vmatprep.subr.mxu1 %v4277_v31 }
 0xfd6   :  { %4705 = vmatpush3.msra.mxu1 %v4277_v31  ;;  %v4011_v31 = vld [vmem:[#allocation8 + $0x18] sm:$0xff] }
 0xfd7   :  { %3714 = vadd.xlane.f32.xlu0 %v3713_v29  ;;  %4728 = vmatprep.subr.mxu1 %v4983_v11 }
 0xfdb   :  { %3717 = vadd.xlane.f32.xlu0 %v3716_v22 }
0x105a   :  { %v3708_v33 = vpop.xlane.xlu1 %3707 }
0x105b   :  { %v3710_v34 = vmul.f32 0.03125, %v3708_v33  ;;  %v4008_v33 = vld [vmem:[#allocation8] sm:$0xff] }
0x105c   :  { %v3705_v32 = vpop.xlane.xlu0 %3704 }
0x105d   :  { %v3709_v12 = vmul.f32 0.03125, %v3705_v32  ;;  %v3722_v44 = vmul.f32 %v3710_v34, %v3710_v34  ;;  %v3726_v53 = vsub.f32 %v3698_v23, %v3710_v34  ;;  %v4010_v32 = vld [vmem:[#allocation8 + $0x10] sm:$0xff] }
0x105f   :  { %v3721_v38 = vmul.f32 %v3709_v12, %v3709_v12  ;;  %v3725_v42 = vsub.f32 %v3697_v25, %v3709_v12  ;;  %v4009_v12 = vld [vmem:[#allocation8 + $0x8] sm:$0xff] }
0x1060   :  { %v3715_v36 = vpop.xlane.xlu0 %3714 }
0x1061   :  { %v3719_v39 = vmul.f32 0.03125, %v3715_v36 }
0x1063   :  { %v3723_v41 = vsub.f32 %v3719_v39, %v3721_v38 }
0x1064   :  { %v3718_v43 = vpop.xlane.xlu0 %3717 }
0x1065   :  { %v3727_v45 = vadd.f32 1e-12, %v3723_v41  ;;  %v3720_v46 = vmul.f32 0.03125, %v3718_v43 }
0x1067   :  { %4854 = vrsqrt.f32 %v3727_v45  ;;  %v3724_v47 = vsub.f32 %v3720_v46, %v3722_v44 }
0x1069   :  { %v3728_v48 = vadd.f32 1e-12, %v3724_v47 }
0x106b   :  { %4856 = vrsqrt.f32 %v3728_v48 }
0x1074   :  { %v4855_v49 = vpop.eup %4854 }
0x1075   :  { %v3731_v51 = vmul.f32 %v4855_v49, %v3725_v42 }
0x1077   :  { %v3739_v54 = vmul.f32 %v4275_v50, %v3731_v51 }
0x1078   :  { %v4857_v55 = vpop.eup %4856 }
0x1079   :  { %v3732_v56 = vmul.f32 %v4857_v55, %v3726_v53  ;;  %v3747_v0 = vadd.f32 %v4276_v52, %v3739_v54  ;;  %v4299_v53 = vld [vmem:[%s5732_s16 + $0x1] ss:$0 sm:$0xff] }
0x107b   :  { %v3740_v57 = vmul.f32 %v4275_v50, %v3732_v56  ;;  %4706 = vmatprep.mubr.msk.f32.mxu1 %vm237_vm3, %v3747_v0 }
0x107d   :  { %v3748_v60 = vadd.f32 %v4276_v52, %v3740_v57 }
0x107f   :  { %4707 = vmatmul.mubr.msk.f32.vlgmr.msra.gmra.mxu1 %vm237_vm3, %v3748_v60 }
0x1080   :  { %4736 = vmatprep.mubr.msk.f32.mxu1 %vm4984_vm4, %v4983_v11  ;;  %4729 = vmatpush3.msra.mxu1 %v4011_v31 }
0x1081   :  { %4730 = vmatprep.subr.mxu1 %v4983_v11 }
0x1082   :  { %4731 = vmatpush3.msra.mxu1 %v4010_v32 }
0x1083   :  { %4732 = vmatprep.subr.mxu1 %v4983_v11 }
0x1084   :  { %4733 = vmatpush3.msra.mxu1 %v4009_v12 }
0x1085   :  { %4734 = vmatprep.subr.mxu1 %v4983_v11 }
0x1086   :  { %4735 = vmatpush3.msra.mxu1 %v4008_v33 }
0x1087   :  { %4739 = vmatprep.subr.mxu1 %v4983_v11 }
0x113f   :  { %v4708_v6 = vpop.f32.mrf.mxu1 }
0x1140   :  { %v3840_v7 = vadd.f32 %v4708_v6, %v4282_v5  ;;  %v4301_v6 = vld [vmem:[%s5735_s19] ss:$0 sm:$0xff] }
0x1141   :  { %v3834_v8 = vpop.f32.mrf.mxu1 }
0x1142   :  { %v3846_v9 = vmul.f32 0.70710677, %v3840_v7  ;;  %v3835_v10 = vadd.f32 %v4282_v5, %v3834_v8  ;;  %v3844_v18 = vmul.f32 0.5, %v3840_v7  ;;  %v4093_v5 = vld [vmem:[%s5736_s20] sm:$0xff]  ;;  %s4998_s20 = smov [#allocation10]  }
0x1143   :  { %s4184_s3 = sshll.u32 %s4998_s20, 4  ;;  %s4185_s3 = int_to_ptr.vmem [resolvable:$true] %s4184_s3 }
0x1144   :  { %4858 = verf.f32 %v3846_v9  ;;  %v3845_v13 = vmul.f32 0.70710677, %v3835_v10  ;;  %v3843_v16 = vmul.f32 0.5, %v3835_v10  ;;  %s4948_s9 = scalar_lea.vmem %s4185_s3, 32  ;;  %p4953_p7 = scmp.lt.s32.totalorder %s4185_s3, %s4185_s3 }
0x1145   :  { %p4949_p6 = scmp.ne.s32.totalorder %s4185_s3, %s4948_s9  ;;  %p4954_p8 = scmp.lt.s32.totalorder %s4948_s9, %s4948_s9 }
0x1146   :  { %4860 = verf.f32 %v3845_v13  ;;  %v4303_v13 = vld [vmem:[%s5737_s21] ss:$0 sm:$0xff] }
0x1147   :  { %p4955_p9 = por %p4954_p8, %p4953_p7 }
0x1149   :  { %p4956_p10 = pnand %p4955_p9, %p4949_p6 }
0x1151   :  { %v4859_v63 = vpop.eup %4858 }
0x1152   :  { %v3850_v15 = vadd.f32 1.0, %v4859_v63 }
0x1153   :  { %v4861_v14 = vpop.eup %4860 }
0x1154   :  { %v3849_v17 = vadd.f32 1.0, %v4861_v14  ;;  %v3852_v20 = vmul.f32 %v3850_v15, %v3844_v18 }
0x1156   :  { %v3851_v19 = vmul.f32 %v3849_v17, %v3843_v16 }
0x1158   :  { %4725 = vmatprep.mubr.msk.f32.mxu0 %vm153_vm0, %v3851_v19 }
0x1159   :  { %4726 = vmatmul.mubr.msk.f32.vlgmr.msra.gmra.mxu0 %vm153_vm0, %v3852_v20 }
0x1219   :  { %v4727_v23 = vpop.f32.mrf.mxu0 }
0x121a   :  { %v3948_v24 = vadd.f32 %v4727_v23, %v4294_v21 }
0x121b   :  { %v3942_v25 = vpop.f32.mrf.mxu0 }
0x121c   :  { %v3952_v26 = vadd.f32 %v3948_v24, %v3748_v60  ;;  %v3943_v27 = vadd.f32 %v4294_v21, %v3942_v25 }
0x121e   :  { %v3951_v28 = vadd.f32 %v3943_v27, %v3747_v0  ;;  %v3960_v29 = vsel %vm237_vm3, %v3952_v26, 0.0  ;;  %v3966_v40 = vmul.f32 %v3952_v26, %v3952_v26  ;;  %v4300_v0 = vld [vmem:[%s5733_s17 + $0x1] ss:$0 sm:$0xff] }
0x121f   :  { %3961 = vadd.xlane.f32.xlu1 %v3960_v29 }
0x1220   :  { %v3957_v22 = vsel %vm237_vm3, %v3951_v28, 0.0  ;;  %v3965_v37 = vmul.f32 %v3951_v28, %v3951_v28  ;;  %v3970_v35 = vsel %vm237_vm3, %v3966_v40, 0.0 }
0x1221   :  { %3958 = vadd.xlane.f32.xlu0 %v3957_v22 }
0x1222   :  { %v3967_v30 = vsel %vm237_vm3, %v3965_v37, 0.0 }
0x1223   :  { %3971 = vadd.xlane.f32.xlu1 %v3970_v35 }
0x1225   :  { %3968 = vadd.xlane.f32.xlu0 %v3967_v30 }
0x12a8   :  { %v3962_v36 = vpop.xlane.xlu1 %3961 }
0x12a9   :  { %v3964_v34 = vmul.f32 0.03125, %v3962_v36 }
0x12aa   :  { %v3959_v38 = vpop.xlane.xlu0 %3958 }
0x12ab   :  { %v3963_v39 = vmul.f32 0.03125, %v3959_v38  ;;  %v3976_v43 = vmul.f32 %v3964_v34, %v3964_v34  ;;  %v3980_v51 = vsub.f32 %v3952_v26, %v3964_v34 }
0x12ac   :  { %v3972_v41 = vpop.xlane.xlu1 %3971 }
0x12ad   :  { %v3974_v44 = vmul.f32 0.03125, %v3972_v41  ;;  %v3975_v46 = vmul.f32 %v3963_v39, %v3963_v39  ;;  %v3979_v54 = vsub.f32 %v3951_v28, %v3963_v39 }
0x12ae   :  { %v3969_v45 = vpop.xlane.xlu0 %3968 }
0x12af   :  { %v3978_v47 = vsub.f32 %v3974_v44, %v3976_v43  ;;  %v3973_v48 = vmul.f32 0.03125, %v3969_v45 }
0x12b1   :  { %v3982_v42 = vadd.f32 1e-12, %v3978_v47  ;;  %v3977_v49 = vsub.f32 %v3973_v48, %v3975_v46 }
0x12b3   :  { %4862 = vrsqrt.f32 %v3982_v42  ;;  %v3981_v50 = vadd.f32 1e-12, %v3977_v49 }
0x12b5   :  { %4864 = vrsqrt.f32 %v3981_v50 }
0x12c0   :  { %v4863_v52 = vpop.eup %4862 }
0x12c1   :  { %v3986_v55 = vmul.f32 %v4863_v52, %v3980_v51 }
0x12c2   :  { %v4865_v56 = vpop.eup %4864 }
0x12c3   :  { %v3985_v57 = vmul.f32 %v4865_v56, %v3979_v54  ;;  %v3994_v60 = vmul.f32 %v4299_v53, %v3986_v55 }
0x12c5   :  { %v3993_v61 = vmul.f32 %v4299_v53, %v3985_v57  ;;  %v4002_v62 = vadd.f32 %v4300_v0, %v3994_v60 }
0x12c7   :  { %v4001_v1 = vadd.f32 %v4300_v0, %v3993_v61  ;;  %v4004_v2 = vrot.slane %v4002_v62, 7 }
0x12c9   :  { %v4007_v59 = vsel %vm4006_vm8, %v4001_v1, %v4004_v2 }
0x12ca   :  { %4737 = vmatmul.mubr.msk.f32.vlgmr.msra.gmra.mxu1 %vm237_vm3, %v4007_v59 }
0x12cb   :  { %4747 = vmatprep.mubr.msk.f32.mxu1 %vm4984_vm4, %v4983_v11  ;;  %4740 = vmatpush3.msra.mxu1 %v4096_v58 }
0x12cc   :  { %4741 = vmatprep.subr.mxu1 %v4983_v11 }
0x12cd   :  { %4742 = vmatpush3.msra.mxu1 %v4095_v3 }
0x12ce   :  { %4743 = vmatprep.subr.mxu1 %v4983_v11 }
0x12cf   :  { %4744 = vmatpush3.msra.mxu1 %v4094_v4 }
0x12d0   :  { %4745 = vmatprep.subr.mxu1 %v4983_v11 }
0x12d1   :  { %4746 = vmatpush3.msra.mxu1 %v4093_v5 }
0x138a   :  { %v4088_v7 = vpop.f32.mrf.mxu1 }
0x138b   :  { %v4089_v8 = vadd.f32 %v4301_v6, %v4088_v7 }
0x138c   :  { %v4738_v9 = vpop.f32.mrf.mxu1 }
0x138d   :  { %4866 = vtanh.f32 %v4089_v8 }
0x139a   :  { %v4867_v10 = vpop.eup %4866 }
0x139b   :  { %4748 = vmatmul.mubr.msk.f32.vlgmr.msra.gmra.mxu1 %vm237_vm3, %v4867_v10 }
0x145b   :  { %v4173_v63 = vpop.f32.mrf.mxu1 }
0x145c   :  { %v4174_v11 = vadd.f32 %v4303_v13, %v4173_v63 }
0x145d   :  { %v4749_v14 = vpop.f32.mrf.mxu1 }
0x145e   :  { %4177 = vst [vmem:[#allocation10] sm:$0x3] %v4174_v11 }
0x145f   :  { %4959 = shalt.err (!%p4956_p10)
}
0x1460   :  { %4187 = dma.vmem_to_hbm [thread:$0]  %s4185_s3, 32, %s5738_s22, [#allocation4]  }
0x1461   :  { %4974 = dma.done.wait [#allocation4], 32  }
0x1462   :  { %4975 = vsyncadd [#allocation4], 4294967264 }
0x1463   :  { %4191 = vsyncpa [#allocation3], 1 }
0x1464   :  { %4192 = vsyncpa [#allocation6], 1 }
0x1465   :  { %4193 = vsyncpa [#allocation9], 1 }
0x1466   :  { %4194 = vsyncpa [#allocation4], 1 }

</bundles_post_ra>
